<compile_context>
chip_gen: v6e
topology: v6e:2x2x1
jax: 0.10.0
libtpu: 0.0.40
codegen_flags: <defaults>
</compile_context>

<pallas_src>
import functools
import math

import jax
import jax.numpy as jnp
import numpy as np
from jax.experimental import pallas as pl
from jax.experimental.pallas import tpu as pltpu


def _round_up(x, m):
    return (x + m - 1) // m * m


# ---------------------------------------------------------------------------
# Pallas kernels
# ---------------------------------------------------------------------------
def ngcf_layer_kernel(cnt_ref, idx_ref, adj_ref, emb_k_ref, emb_i_ref,
                      wcat_ref, bsum_ref, out_ref, norm_ref, acc_ref):
    """One NGCF propagation layer for one tile of rows.

    Grid = (row_tiles, max_nonzero_k_blocks).  cnt_ref[i] gives the number of
    nonzero adjacency k-blocks for row tile i; idx_ref[i, s] their k-block
    indices (padded by repeating the last index so padding steps re-use the
    already-resident block and issue no new DMA and no matmul).
    """
    i = pl.program_id(0)
    s = pl.program_id(1)
    dp = out_ref.shape[-1]

    @pl.when(s == 0)
    def _():
        acc_ref[...] = jnp.zeros_like(acc_ref)

    # agg[i_tile] += adj[i_tile, k_block] @ emb[k_block]   (bf16 in, f32 acc)
    @pl.when(s < cnt_ref[i])
    def _():
        acc_ref[:, :dp] += jnp.dot(adj_ref[...], emb_k_ref[...],
                                   preferred_element_type=jnp.float32)

    @pl.when(s == pl.num_programs(1) - 1)
    def _():
        agg = acc_ref[:, :dp]
        # Fused epilogue: [agg | emb*agg] @ [[W1^T],[W2^T]] + (b1 + b2),
        # one MXU call with K = 2*Dp (all math kept in f32; v5e-friendly).
        acc_ref[:, dp:] = emb_i_ref[...] * agg
        h = jnp.dot(acc_ref[...], wcat_ref[...],
                    preferred_element_type=jnp.float32) + bsum_ref[...]
        # LeakyReLU, default negative_slope = 0.01
        e = jnp.where(h >= 0.0, h, 0.01 * h)
        out_ref[...] = e.astype(out_ref.dtype)
        # F.normalize(p=2, dim=1, eps=1e-12) via EUP rsqrt:
        #   max(sqrt(ss), 1e-12) == sqrt(max(ss, 1e-24))
        ss = jnp.sum(e * e, axis=1, keepdims=True)
        norm_ref[...] = (e * jax.lax.rsqrt(jnp.maximum(ss, 1e-24))
                         ).astype(norm_ref.dtype)


def bpr_loss_kernel(u_ref, p_ref, n_ref, out_ref):
    """BPR loss: -mean(log_sigmoid(sum(u*pos,1) - sum(u*neg,1)))."""
    u = u_ref[...]
    pos_y = jnp.sum(u * p_ref[...], axis=1, keepdims=True)
    neg_y = jnp.sum(u * n_ref[...], axis=1, keepdims=True)
    x = pos_y - neg_y
    # Numerically stable log(sigmoid(x)) (no -inf underflow).
    log_sig = jnp.minimum(x, 0.0) - jnp.log(1.0 + jnp.exp(-jnp.abs(x)))
    out_ref[0, 0] = -jnp.mean(log_sig)


# ---------------------------------------------------------------------------
# Wrappers
# ---------------------------------------------------------------------------
@functools.partial(jax.jit, static_argnames=("tm", "tk"))
def ngcf_layer(counts, idx, adj_b16, emb_b16, emb_f32, wcat, bsum, *, tm, tk):
    Np, Dp = emb_f32.shape
    n_rt = Np // tm
    max_b = idx.shape[1]

    out, norm = pl.pallas_call(
        ngcf_layer_kernel,
        out_shape=(jax.ShapeDtypeStruct((Np, Dp), jnp.float32),
                   jax.ShapeDtypeStruct((Np, Dp), jnp.float32)),
        grid_spec=pltpu.PrefetchScalarGridSpec(
            num_scalar_prefetch=2,
            grid=(n_rt, max_b),
            in_specs=[
                # adjacency tile, block-sparse column index from SMEM table
                pl.BlockSpec((tm, tk),
                             lambda i, s, cnt_r, idx_r: (i, idx_r[i, s])),
                # streamed embedding k-block (bf16, reduction operand)
                pl.BlockSpec((tk, Dp),
                             lambda i, s, cnt_r, idx_r: (idx_r[i, s], 0)),
                # resident embedding rows for this row-tile (f32, elementwise)
                pl.BlockSpec((tm, Dp), lambda i, s, cnt_r, idx_r: (i, 0)),
                # fused weights [W1^T ; W2^T] and fused bias b1+b2 (resident)
                pl.BlockSpec((2 * Dp, Dp), lambda i, s, cnt_r, idx_r: (0, 0)),
                pl.BlockSpec((1, Dp), lambda i, s, cnt_r, idx_r: (0, 0)),
            ],
            out_specs=[
                pl.BlockSpec((tm, Dp), lambda i, s, cnt_r, idx_r: (i, 0)),
                pl.BlockSpec((tm, Dp), lambda i, s, cnt_r, idx_r: (i, 0)),
            ],
            scratch_shapes=[pltpu.VMEM((tm, 2 * Dp), jnp.float32)],
        ),
        compiler_params=pltpu.CompilerParams(
            dimension_semantics=("parallel", "arbitrary"),
            # Explicit, conservative limit: fits v7x's 64 MiB physical VMEM
            # with headroom; actual usage at tm=tk=512 is only a few MiB.
            vmem_limit_bytes=32 * 1024 * 1024),
    )(counts, idx, adj_b16, emb_b16, emb_f32, wcat, bsum)
    return out, norm


@jax.jit
def bpr_loss(batch_user_emb, batch_pos_emb, batch_neg_emb):
    # TODO(synk): tile over the batch with a grid + scalar accumulator for
    # very large batches; untiled VMEM blocks are fine at this scale.
    loss = pl.pallas_call(
        bpr_loss_kernel,
        out_shape=jax.ShapeDtypeStruct((1, 1), jnp.float32),
        in_specs=[pl.BlockSpec(memory_space=pltpu.MemorySpace.VMEM)] * 3,
        out_specs=pl.BlockSpec(memory_space=pltpu.MemorySpace.SMEM),
    )(batch_user_emb, batch_pos_emb, batch_neg_emb)
    return loss[0, 0]


def _block_structure(adj_np, tm, tk):
    """Blocked-CSR structure of the padded adjacency.

    Per row-tile: count of nonzero k-blocks and their indices, padded by
    repeating the last valid index (so the pipeline keeps the same block
    resident and skips both the DMA and, via pl.when, the matmul)."""
    n_rt, n_kt = adj_np.shape[0] // tm, adj_np.shape[1] // tk
    nz = (adj_np.reshape(n_rt, tm, n_kt, tk) != 0.0).any(axis=(1, 3))
    counts = nz.sum(axis=1).astype(np.int32)
    max_b = max(int(counts.max()), 1)
    idx = np.zeros((n_rt, max_b), np.int32)
    for r in range(n_rt):
        cols = np.nonzero(nz[r])[0]
        if cols.size:
            idx[r, :cols.size] = cols
            idx[r, cols.size:] = cols[-1]
    return jnp.asarray(counts), jnp.asarray(idx)


def ngcf_forward(params, adj, u, i, j, *, n_users, n_items, n_layers,
                 tm=512, tk=512):
    """Full NGCF.forward: Pallas layer propagation + gather/concat glue.

    On v7x pick tm so (padded N)//tm >= 2 to let the 'parallel' row axis
    shard across the two TensorCores."""
    D = params["user_embeddings"].shape[1]
    N = n_users + n_items
    Dp = _round_up(D, 128)                       # lane-dense embedding dim
    tm = min(tm, _round_up(N, 128))
    tk = min(tk, _round_up(N, 128))
    lcm = tm * tk // math.gcd(tm, tk)
    Np = _round_up(N, lcm)                       # grid-divisible row count

    # Padded adjacency stored in bf16 (it dominates HBM traffic; the f32
    # accumulation happens in the kernel scratch).
    # TODO(synk): the torch code does torch.sparse.mm over row splits; here
    # the same math runs as a block-sparse dense-tile matmul.
    adj_np = np.zeros((Np, Np), np.float32)
    adj_np[:N, :N] = np.asarray(adj, np.float32)
    counts, idx = _block_structure(adj_np, tm, tk)
    adj_b16 = jnp.asarray(adj_np, dtype=jnp.bfloat16)

    emb0 = jnp.concatenate(
        [params["user_embeddings"], params["item_embeddings"]], axis=0)
    emb_p = jnp.pad(emb0, ((0, Np - N), (0, Dp - D)))

    # Per-layer fused & zero-padded weights: [W1^T ; W2^T], b1+b2.
    wcats, bsums = [], []
    for l in range(n_layers):
        w1 = jnp.pad(params["W1t"][l], ((0, Dp - D), (0, Dp - D)))
        w2 = jnp.pad(params["W2t"][l], ((0, Dp - D), (0, Dp - D)))
        wcats.append(jnp.concatenate([w1, w2], axis=0))
        bsums.append(jnp.pad(params["b1"][l] + params["b2"][l],
                             ((0, 0), (0, Dp - D))))

    finals = [emb0]
    for l in range(n_layers):
        out, norm = ngcf_layer(counts, idx, adj_b16,
                               emb_p.astype(jnp.bfloat16), emb_p,
                               wcats[l], bsums[l], tm=tm, tk=tk)
        finals.append(norm[:N, :D])
        emb_p = out                              # padded cols stay exactly 0

    final_embeddings = jnp.concatenate(finals, axis=1)
    final_u = final_embeddings[:n_users]
    final_i = final_embeddings[n_users:]
    # TODO(synk): torch re-binds user/item_embeddings_final Parameters; that
    # stateful side effect has no functional-JAX equivalent here.
    return bpr_loss(final_u[u], final_i[i], final_i[j])


# ---------------------------------------------------------------------------
# Pure-JAX reference (same math and same bf16 precision policy for adj@emb)
# ---------------------------------------------------------------------------
def ngcf_forward_ref(params, adj, u, i, j, *, n_users, n_items, n_layers):
    adj_q = adj.astype(jnp.bfloat16)
    emb = jnp.concatenate(
        [params["user_embeddings"], params["item_embeddings"]], axis=0)
    finals = [emb]
    for l in range(n_layers):
        agg = jnp.dot(adj_q, emb.astype(jnp.bfloat16),
                      preferred_element_type=jnp.float32)
        t1 = agg @ params["W1t"][l] + params["b1"][l]
        t2 = (emb * agg) @ params["W2t"][l] + params["b2"][l]
        h = t1 + t2
        emb = jnp.where(h >= 0, h, 0.01 * h)
        nrm = jnp.maximum(jnp.sqrt(jnp.sum(emb * emb, axis=1, keepdims=True)),
                          1e-12)
        finals.append(emb / nrm)
    fin = jnp.concatenate(finals, axis=1)
    fu, fi = fin[:n_users], fin[n_users:]
    x = jnp.sum(fu[u] * fi[i], axis=1) - jnp.sum(fu[u] * fi[j], axis=1)
    return -jnp.mean(jax.nn.log_sigmoid(x))


# ---------------------------------------------------------------------------
# Deterministic parameter init (xavier_uniform, mirroring init_weights)
# ---------------------------------------------------------------------------
def xavier_uniform(key, shape):
    bound = float(np.sqrt(6.0 / (shape[0] + shape[1])))
    return jax.random.uniform(key, shape, jnp.float32, -bound, bound)


def make_params(key, n_users, n_items, embed_size, n_layers):
    keys = jax.random.split(key, 2 + 4 * n_layers)
    params = {
        "user_embeddings": xavier_uniform(keys[0], (n_users, embed_size)),
        "item_embeddings": xavier_uniform(keys[1], (n_items, embed_size)),
        "W1t": [], "b1": [], "W2t": [], "b2": [],
    }
    for l in range(n_layers):
        k1, k2, k3, k4 = keys[2 + 4 * l: 6 + 4 * l]
        # Linear weight (out, in) xavier'd, stored transposed (in, out).
        params["W1t"].append(xavier_uniform(k1, (embed_size, embed_size)).T)
        params["W2t"].append(xavier_uniform(k2, (embed_size, embed_size)).T)
        bound = 1.0 / np.sqrt(embed_size)        # default nn.Linear bias init
        params["b1"].append(
            jax.random.uniform(k3, (1, embed_size), jnp.float32, -bound, bound))
        params["b2"].append(
            jax.random.uniform(k4, (1, embed_size), jnp.float32, -bound, bound))
    return params


# ---------------------------------------------------------------------------
if __name__ == "__main__":
    n_users, n_items = 128, 128                  # N = 256
    embed_size = 32
    n_layers = 2
    batch = 8

    key = jax.random.PRNGKey(0)
    kparams, kadj, ku, ki, kj = jax.random.split(key, 5)

    params = make_params(kparams, n_users, n_items, embed_size, n_layers)

    N = n_users + n_items
    # Sparse normalized adjacency stand-in for the Laplacian; one full
    # 128x128 block is zeroed so the block-sparse skip path is exercised.
    raw = jax.random.uniform(kadj, (N, N), jnp.float32)
    adj = jnp.where(raw > 0.9, raw, 0.0)
    adj = adj.at[:128, 128:].set(0.0)
    adj = adj / jnp.maximum(jnp.sum(adj, axis=1, keepdims=True), 1e-6)

    u = jax.random.randint(ku, (batch,), 0, n_users)
    i = jax.random.randint(ki, (batch,), 0, n_items)
    j = jax.random.randint(kj, (batch,), 0, n_items)

    # tm=tk=128 at this toy size gives a 2x2 block grid (multi-block path);
    # production defaults are 512.
    loss = ngcf_forward(params, adj, u, i, j, n_users=n_users, n_items=n_items,
                        n_layers=n_layers, tm=128, tk=128)
    loss = jax.block_until_ready(loss)

    loss_ref = ngcf_forward_ref(params, adj, u, i, j, n_users=n_users,
                                n_items=n_items, n_layers=n_layers)
    np.testing.assert_allclose(np.asarray(loss), np.asarray(loss_ref),
                               rtol=2e-2, atol=2e-2)
    print("KERNEL_OK")
</pallas_src>

<mosaic_0001>
module attributes {stable_mosaic.version = 11 : i64} {
  func.func @ngcf_layer_kernel(%arg0: i32, %arg1: i32, %arg2: memref<2xi32, #tpu.memory_space<smem>>, %arg3: memref<2x2xi32, #tpu.memory_space<smem>>, %arg4: memref<128x128xbf16, #tpu.memory_space<vmem>>, %arg5: memref<128x128xbf16, #tpu.memory_space<vmem>>, %arg6: memref<128x128xf32, #tpu.memory_space<vmem>>, %arg7: memref<256x128xf32, #tpu.memory_space<vmem>>, %arg8: memref<1x128xf32, #tpu.memory_space<vmem>>, %arg9: memref<128x128xf32, #tpu.memory_space<vmem>>, %arg10: memref<128x128xf32, #tpu.memory_space<vmem>>, %arg11: memref<128x256xf32, #tpu.memory_space<vmem>>) attributes {dimension_semantics = [#tpu.dimension_semantics<parallel>, #tpu.dimension_semantics<arbitrary>], iteration_bounds = array<i64: 2, 2>, scalar_prefetch = 2 : i64, scratch_operands = 1 : i64, tpu.core_type = #tpu.core_type<tc>, window_params = [{transform_indices = @transform_0, window_bounds = array<i64: 128, 128>}, {transform_indices = @transform_1, window_bounds = array<i64: 128, 128>}, {transform_indices = @transform_2, window_bounds = array<i64: 128, 128>}, {pipeline_mode = #tpu.pipeline_mode<synchronous>, transform_indices = @transform_3, window_bounds = array<i64: 256, 128>}, {pipeline_mode = #tpu.pipeline_mode<synchronous>, transform_indices = @transform_4, window_bounds = array<i64: 1, 128>}, {transform_indices = @transform_5, window_bounds = array<i64: 128, 128>}, {transform_indices = @transform_6, window_bounds = array<i64: 128, 128>}]} {
    %c0_i32 = arith.constant 0 : i32
    %0 = arith.cmpi eq, %arg1, %c0_i32 : i32
    %1 = arith.extui %0 : i1 to i32
    %c0_i32_0 = arith.constant 0 : i32
    %2 = arith.cmpi ne, %1, %c0_i32_0 : i32
    scf.if %2 {
      %cst = arith.constant 0.000000e+00 : f32
      %11 = vector.broadcast %cst : f32 to vector<128x256xf32>
      %c0 = arith.constant 0 : index
      %c0_3 = arith.constant 0 : index
      %12 = vector.load %arg11[%c0, %c0_3] : memref<128x256xf32, #tpu.memory_space<vmem>>, vector<128x256xf32>
      tpu.vector_store %arg11[%c0, %c0_3], %11 {strides = array<i32>} : memref<128x256xf32, #tpu.memory_space<vmem>>, vector<128x256xf32>,
    } else {
    }
    %3 = arith.index_cast %arg0 : i32 to index
    %4 = memref.load %arg2[%3] : memref<2xi32, #tpu.memory_space<smem>>
    %5 = arith.cmpi slt, %arg1, %4 : i32
    %6 = arith.extui %5 : i1 to i32
    %c0_i32_1 = arith.constant 0 : i32
    %7 = arith.cmpi ne, %6, %c0_i32_1 : i32
    scf.if %7 {
      %c0 = arith.constant 0 : index
      %c0_3 = arith.constant 0 : index
      %11 = vector.load %arg11[%c0, %c0_3] : memref<128x256xf32, #tpu.memory_space<vmem>>, vector<128x128xf32>
      %c0_4 = arith.constant 0 : index
      %c0_5 = arith.constant 0 : index
      %12 = vector.load %arg4[%c0_4, %c0_5] : memref<128x128xbf16, #tpu.memory_space<vmem>>, vector<128x128xbf16>
      %c0_6 = arith.constant 0 : index
      %c0_7 = arith.constant 0 : index
      %13 = vector.load %arg5[%c0_6, %c0_7] : memref<128x128xbf16, #tpu.memory_space<vmem>>, vector<128x128xbf16>
      %cst = arith.constant dense<0.000000e+00> : vector<128x128xf32>
      %14 = tpu.matmul %12, %13, %cst {dimension_numbers = #tpu.dot_dimension_numbers<[1], [0], [0], [1], [0, 0, 1, 1], [], []>} : vector<128x128xbf16>, vector<128x128xbf16>, vector<128x128xf32> -> vector<128x128xf32>
      %15 = arith.addf %11, %14 : vector<128x128xf32>
      %c0_8 = arith.constant 0 : index
      %c0_9 = arith.constant 0 : index
      %16 = vector.load %arg11[%c0_8, %c0_9] : memref<128x256xf32, #tpu.memory_space<vmem>>, vector<128x128xf32>
      tpu.vector_store %arg11[%c0_8, %c0_9], %15 {strides = array<i32>} : memref<128x256xf32, #tpu.memory_space<vmem>>, vector<128x128xf32>,
    } else {
    }
    %c1_i32 = arith.constant 1 : i32
    %8 = arith.cmpi eq, %arg1, %c1_i32 : i32
    %9 = arith.extui %8 : i1 to i32
    %c0_i32_2 = arith.constant 0 : i32
    %10 = arith.cmpi ne, %9, %c0_i32_2 : i32
    scf.if %10 {
      %c0 = arith.constant 0 : index
      %c0_3 = arith.constant 0 : index
      %11 = vector.load %arg11[%c0, %c0_3] : memref<128x256xf32, #tpu.memory_space<vmem>>, vector<128x128xf32>
      %c0_4 = arith.constant 0 : index
      %c0_5 = arith.constant 0 : index
      %12 = vector.load %arg6[%c0_4, %c0_5] : memref<128x128xf32, #tpu.memory_space<vmem>>, vector<128x128xf32>
      %13 = arith.mulf %12, %11 : vector<128x128xf32>
      %c0_6 = arith.constant 0 : index
      %c128 = arith.constant 128 : index
      %14 = vector.load %arg11[%c0_6, %c128] : memref<128x256xf32, #tpu.memory_space<vmem>>, vector<128x128xf32>
      tpu.vector_store %arg11[%c0_6, %c128], %13 {strides = array<i32>} : memref<128x256xf32, #tpu.memory_space<vmem>>, vector<128x128xf32>,
      %c0_7 = arith.constant 0 : index
      %c0_8 = arith.constant 0 : index
      %15 = vector.load %arg11[%c0_7, %c0_8] : memref<128x256xf32, #tpu.memory_space<vmem>>, vector<128x256xf32>
      %c0_9 = arith.constant 0 : index
      %c0_10 = arith.constant 0 : index
      %16 = vector.load %arg7[%c0_9, %c0_10] : memref<256x128xf32, #tpu.memory_space<vmem>>, vector<256x128xf32>
      %cst = arith.constant dense<0.000000e+00> : vector<128x128xf32>
      %17 = tpu.matmul %15, %16, %cst {dimension_numbers = #tpu.dot_dimension_numbers<[1], [0], [0], [1], [0, 0, 1, 1], [], []>} : vector<128x256xf32>, vector<256x128xf32>, vector<128x128xf32> -> vector<128x128xf32>
      %c0_11 = arith.constant 0 : index
      %c0_12 = arith.constant 0 : index
      %18 = vector.load %arg8[%c0_11, %c0_12] : memref<1x128xf32, #tpu.memory_space<vmem>>, vector<1x128xf32>
      %19 = vector.broadcast %18 : vector<1x128xf32> to vector<128x128xf32>
      %20 = arith.addf %17, %19 : vector<128x128xf32>
      %cst_13 = arith.constant 0.000000e+00 : f32
      %21 = vector.broadcast %cst_13 : f32 to vector<128x128xf32>
      %22 = arith.cmpf oge, %20, %21 : vector<128x128xf32>
      %cst_14 = arith.constant 0.00999999977 : f32
      %23 = vector.broadcast %cst_14 : f32 to vector<128x128xf32>
      %24 = arith.mulf %23, %20 : vector<128x128xf32>
      %25 = arith.select %22, %20, %24 : vector<128x128xi1>, vector<128x128xf32>
      %c0_15 = arith.constant 0 : index
      %c0_16 = arith.constant 0 : index
      %26 = vector.load %arg9[%c0_15, %c0_16] : memref<128x128xf32, #tpu.memory_space<vmem>>, vector<128x128xf32>
      tpu.vector_store %arg9[%c0_15, %c0_16], %25 {strides = array<i32>} : memref<128x128xf32, #tpu.memory_space<vmem>>, vector<128x128xf32>,
      %27 = arith.mulf %25, %25 : vector<128x128xf32>
      %cst_17 = arith.constant dense<0.000000e+00> : vector<128xf32>
      %28 = vector.multi_reduction <add>, %27, %cst_17 [1] : vector<128x128xf32> to vector<128xf32>
      %29 = vector.shape_cast %28 : vector<128xf32> to vector<128x1xf32>
      %cst_18 = arith.constant 1.000000e-24 : f32
      %30 = vector.broadcast %cst_18 : f32 to vector<128x1xf32>
      %31 = arith.maximumf %29, %30 : vector<128x1xf32>
      %32 = math.rsqrt %31 : vector<128x1xf32>
      %33 = vector.broadcast %32 : vector<128x1xf32> to vector<128x128xf32>
      %34 = arith.mulf %25, %33 : vector<128x128xf32>
      %c0_19 = arith.constant 0 : index
      %c0_20 = arith.constant 0 : index
      %35 = vector.load %arg10[%c0_19, %c0_20] : memref<128x128xf32, #tpu.memory_space<vmem>>, vector<128x128xf32>
      tpu.vector_store %arg10[%c0_19, %c0_20], %34 {strides = array<i32>} : memref<128x128xf32, #tpu.memory_space<vmem>>, vector<128x128xf32>,
    } else {
    }
    return
  }
  func.func @transform_0(%arg0: i32, %arg1: i32, %arg2: memref<2xi32, #tpu.memory_space<smem>>, %arg3: memref<2x2xi32, #tpu.memory_space<smem>>) -> (i32, i32) {
    %0 = arith.index_cast %arg0 : i32 to index
    %1 = arith.index_cast %arg1 : i32 to index
    %2 = memref.load %arg3[%0, %1] : memref<2x2xi32, #tpu.memory_space<smem>>
    %c0_i32 = arith.constant 0 : i32
    return %arg0, %2 : i32, i32
  }
  func.func @transform_1(%arg0: i32, %arg1: i32, %arg2: memref<2xi32, #tpu.memory_space<smem>>, %arg3: memref<2x2xi32, #tpu.memory_space<smem>>) -> (i32, i32) {
    %0 = arith.index_cast %arg0 : i32 to index
    %1 = arith.index_cast %arg1 : i32 to index
    %2 = memref.load %arg3[%0, %1] : memref<2x2xi32, #tpu.memory_space<smem>>
    %c0_i32 = arith.constant 0 : i32
    %c0_i32_0 = arith.constant 0 : i32
    return %2, %c0_i32 : i32, i32
  }
  func.func @transform_2(%arg0: i32, %arg1: i32, %arg2: memref<2xi32, #tpu.memory_space<smem>>, %arg3: memref<2x2xi32, #tpu.memory_space<smem>>) -> (i32, i32) {
    %c0_i32 = arith.constant 0 : i32
    %c0_i32_0 = arith.constant 0 : i32
    return %arg0, %c0_i32 : i32, i32
  }
  func.func @transform_3(%arg0: i32, %arg1: i32, %arg2: memref<2xi32, #tpu.memory_space<smem>>, %arg3: memref<2x2xi32, #tpu.memory_space<smem>>) -> (i32, i32) {
    %c0_i32 = arith.constant 0 : i32
    %c0_i32_0 = arith.constant 0 : i32
    %c0_i32_1 = arith.constant 0 : i32
    return %c0_i32, %c0_i32_0 : i32, i32
  }
  func.func @transform_4(%arg0: i32, %arg1: i32, %arg2: memref<2xi32, #tpu.memory_space<smem>>, %arg3: memref<2x2xi32, #tpu.memory_space<smem>>) -> (i32, i32) {
    %c0_i32 = arith.constant 0 : i32
    %c0_i32_0 = arith.constant 0 : i32
    %c0_i32_1 = arith.constant 0 : i32
    return %c0_i32, %c0_i32_0 : i32, i32
  }
  func.func @transform_5(%arg0: i32, %arg1: i32, %arg2: memref<2xi32, #tpu.memory_space<smem>>, %arg3: memref<2x2xi32, #tpu.memory_space<smem>>) -> (i32, i32) {
    %c0_i32 = arith.constant 0 : i32
    %c0_i32_0 = arith.constant 0 : i32
    return %arg0, %c0_i32 : i32, i32
  }
  func.func @transform_6(%arg0: i32, %arg1: i32, %arg2: memref<2xi32, #tpu.memory_space<smem>>, %arg3: memref<2x2xi32, #tpu.memory_space<smem>>) -> (i32, i32) {
    %c0_i32 = arith.constant 0 : i32
    %c0_i32_0 = arith.constant 0 : i32
    return %arg0, %c0_i32 : i32, i32
  }
}

</mosaic_0001>

<bundles_post_ra>
// kernel: ngcf_layer.1
= control target key start
LH: loop header
LB: loop body
LE: loop exit
PB: predicated region body
PF: predicated region fallthrough
CT: control target
= control target key end

     0   :  { %s2217_s27 = smov [#allocation4]   ;;  %s2218_s30 = smov [#allocation5]   ;;  %s3063_s0 = inlined_call_operand.hbm [shape: s32[2], index: 0, kind: input, shape index: {}]   ;;  %s3064_s2 = inlined_call_operand.hbm [shape: bf16[256,256], index: 2, kind: input, shape index: {}]   ;;  %s3065_s3 = inlined_call_operand.hbm [shape: bf16[256,128], index: 3, kind: input, shape index: {}]   ;;  %s3066_s4 = inlined_call_operand.hbm [shape: f32[256,128], index: 4, kind: input, shape index: {}]   ;;  %s3067_s5 = inlined_call_operand.hbm [shape: f32[256,128], index: 5, kind: input, shape index: {}]   ;;  %s3068_s6 = inlined_call_operand.vmem [shape: f32[1,128], index: 6, kind: input, shape index: {}]   ;;  %s3069_s7 = inlined_call_operand.hbm [shape: f32[256,128], index: 7, kind: output, shape index: {0}]   ;;  %s3070_s8 = inlined_call_operand.hbm [shape: f32[256,128], index: 8, kind: output, shape index: {1}]   ;;  %s3071_s1 = inlined_call_operand.hbm [shape: s32[2,2], index: 1, kind: input, shape index: {}]  }
   0x1   :  { %3098 = sst [smem:[#allocation36_spill]] %s3064_s2 }
   0x2   :  { %3099 = sst [smem:[#allocation37_spill]] %s3065_s3 }
   0x3   :  { %3100 = sst [smem:[#allocation38_spill]] %s3066_s4 }
   0x4   :  { %3101 = sst [smem:[#allocation39_spill]] %s3067_s5 }
   0x5   :  { %3102 = sst [smem:[#allocation40_spill]] %s3068_s6 }
   0x6   :  { %3103 = sst [smem:[#allocation41_spill]] %s3069_s7 }
   0x7   :  { %3104 = sst [smem:[#allocation42_spill]] %s3070_s8 }
   0x8   :  { %15 = dma.hbm_to_smem %s3063_s0, 16, %s2217_s27, [#allocation3] }
   0x9   :  { %17 = dma.hbm_to_smem %s3071_s1, 32, %s2218_s30, [#allocation3] }
   0xa   :  { %2135 = dma.done.wait [#allocation3], 48 }
   0xb   :  { %2136 = vsyncadd [#allocation3], 4294967248 }
   0xc   :  { %19 = sfence }
   0xd   :  { %20 = vsyncpa [#allocation7], 0 }
   0xe   :  { %22 = vsyncpa [#allocation7 + $0x1], 0 }
   0xf   :  { %23 = vsyncpa [#allocation10], 0 }
  0x10   :  { %25 = vsyncpa [#allocation10 + $0x1], 0 }
  0x11   :  { %26 = vsyncpa [#allocation13], 0 }
  0x12   :  { %27 = vsyncpa [#allocation8], 0 }
  0x13   :  { %29 = vsyncpa [#allocation8 + $0x1], 0 }
  0x14   :  { %30 = vsyncpa [#allocation16], 0 }
  0x15   :  { %32 = vsyncpa [#allocation16 + $0x1], 0  ;;  %s2283_s11 = smov 0   ;;  %s2285_s0 = smov 0  }
  0x16   :  { %s2287_s12 = smov 0   ;;  %s2289_s13 = smov 0  }
  0x17   :  { %s2291_s1 = smov 0   ;;  %s2293_s14 = smov 0  }
  0x18   :  { %s2295_s15 = smov 0   ;;  %s2297_s16 = smov 0  }
  0x19   :  { %s2299_s17 = smov 0   ;;  %s2301_s18 = smov 0  }
  0x1a   :  { %s2303_s19 = smov 0   ;;  %s2305_s20 = smov 0  }
  0x1b   :  { %s2307_s21 = smov 0   ;;  %s2309_s22 = smov 0  }
  0x1c LB: > { %3105 = sst [smem:[#allocation28_spill]] %s2183_s14  ;;  %s47_s23 = sadd.s32 1, %s2207_s20  ;;  %s2215_s22 = sphi %s2309_s22, %s38_s22   ;;  %s2211_s21 = sphi %s2307_s21, %s3181_s21   ;;  %s2207_s20 = sphi %s2305_s20, %s3170_s20   ;;  %s2203_s19 = sphi %s2303_s19, %s3180_s19   ;;  %s2199_s18 = sphi %s2301_s18, %s3169_s18   ;;  %s2195_s17 = sphi %s2299_s17, %s3179_s17   ;;  %s2191_s16 = sphi %s2297_s16, %s3178_s16   ;;  %s2187_s15 = sphi %s2295_s15, %s3177_s15   ;;  %s2183_s14 = sphi %s2293_s14, %s3168_s14   ;;  %s2179_s1 = sphi %s2291_s1, %s3176_s1   ;;  %s2175_s13 = sphi %s2289_s13, %s3175_s13   ;;  %s2171_s12 = sphi %s2287_s12, %s3174_s12   ;;  %s2167_s0 = sphi %s2285_s0, %s3173_s0   ;;  %s2163_s11 = sphi %s2283_s11, %s3172_s11  }
  0x1d   : > { %3106 = sst [smem:[#allocation29_spill]] %s2199_s18  ;;  %s50_s24 = sadd.s32 1, %s2211_s21 }
  0x1e   : > { %3107 = sst [smem:[#allocation30_spill]] %s2203_s19  ;;  %p48_p0 = scmp.ge.s32.totalorder %s47_s23, 2 }
  0x1f   : > { %3108 = sst [smem:[#allocation31_spill]] %s2207_s20  ;;  %s54_s25 = sshra.s32 %s2207_s20, 7 }
  0x20   : > { %s56_s26 = sadd.s32 %s2211_s21, %s54_s25  ;;  %s59_s27 = sand.u32 127, %s2207_s20 }
  0x21   : > { %s3183_s23 = smov (%p48_p0, %s47_s23), 0  ;;  %s3185_s24 = smov (!%p48_p0, %s50_s24), %s2211_s21 }
  0x22   : > { %3109 = sst [smem:[#allocation32_spill]] %s3183_s23  ;;  %s1449_s28 = sshll.u32 %s56_s26, 7 }
  0x23   : > { %s62_s29 = sshra.s32 %s3183_s23, 7  ;;  %p52_p1 = scmp.ge.s32.totalorder %s3185_s24, 2 }
  0x24   : > { %s2362_s30 = sadd.s32 %s1449_s28, %s59_s27  ;;  %s67_s10 = sand.u32 127, %s3183_s23 }
  0x25   : > { %s2365_s9 = sld [smem:[#allocation5 + %s2362_s30]]  ;;  %s3187_s24 = smov (%p52_p1, %s3185_s24), 0 }
  0x26   : > { %3110 = sst [smem:[#allocation33_spill]] %s3187_s24  ;;  %p3080_p2 = scmp.eq.s32.totalorder %s2215_s22, 0 }
  0x27   : > { %s105_s25 = sld [smem:[#allocation5 + %s2362_s30]]  ;;  %s64_s26 = sadd.s32 %s62_s29, %s3187_s24 }
  0x28   : > { %s117_s20 = sadd.s32 1, %s2183_s14  ;;  %s1450_s8 = sshll.u32 %s64_s26, 7 }
  0x29   : > { %p124_p3 = scmp.ne.s32.totalorder %s2183_s14, %s2179_s1  ;;  %s68_s7 = sadd.s32 %s1450_s8, %s67_s10 }
  0x2a   : > { %p130_p4 = scmp.ne.s32.totalorder %s2179_s1, %s2175_s13  ;;  %s2378_s27 = sld [smem:[#allocation5 + %s68_s7]] }
  0x2b   : > { %p2382_p5 = por %p124_p3, %p3080_p2  ;;  %s113_s29 = sld [smem:[#allocation5 + %s68_s7]] }
  0x2c   : > { %p3079_p6 = scmp.lt.s32.totalorder %s2215_s22, 4  ;;  %s321_s26 = sand.u32 1, %s2215_s22  }
  0x2d   : > { %s323_s8 = sand.u32 1, %s2183_s14   ;;  %p1453_p11 = scmp.ge.s32.totalorder %s2215_s22, 1 }
  0x2e   : > { %s1461_s10 = sshll.u32 %s323_s8, 6  ;;  %p2393_p7 = pnand %p3079_p6, %p2382_p5 }
  0x2f   : > { %s325_s19 = scalar_lea.vmem [#allocation9], %s1461_s10  ;;  %p261_p12 = scmp.lt.s32.totalorder %s2215_s22, 5 }
  0x30   : > { %s340_s18 = sshll.u32 %s325_s19, 4  ;;  %s2219_s28 = smov [#allocation12]   ;;  %s2397_s18 = int_to_ptr.vmem [resolvable:$true] %s340_s18 }
  0x31   : > { %s114_s6 = ssub.s32 %s105_s25, %s113_s29  ;;  %s2412_s25 = sadd.s32 4294967295, %s2215_s22  }
  0x32   : > { %p115_p8 = scmp.eq.s32.totalorder %s114_s6, 0  ;;  %p3083_p9 = scmp.eq.s32.totalorder %s2412_s25, 0 }
  0x33   : > { %s1689_s7 = scalar_select %p2382_p5, [#allocation5], [#allocation18] }
  0x34   : > { %s2402_s4 = scalar_select %p115_p8, %s2183_s14, %s117_s20  }
  0x35   : > { %s1690_s8 = scalar_select %p2382_p5, %s2362_s30, 0 }
  0x36   : > { %3113 = sst [smem:[#allocation34_spill]] %s2402_s4  ;;  %s3189_s7 = smov (!%p3079_p6, %s1689_s7), [#allocation20] }
  0x37   : > { %s3191_s8 = smov (!%p3079_p6, %s1690_s8), 0  ;;  %p2423_p13 = por %p130_p4, %p3083_p9 }
  0x38   : > { %s333_s2 = sld [smem:[%s3189_s7 + %s3191_s8]]  ;;  %p2427_p0 = pnand %p1453_p11, %p261_p12 }
  0x39   : > { %s3114_s6 = scalar_select %p2423_p13, 1, 0 }
  0x3a   : > { %s3116_s19 = scalar_select %p2427_p0, 1, 0 }
  0x3b   : > { %3115 = sst [smem:[#allocation35_spill]] %s3114_s6  ;;  %s2431_s29 = sshll.u32 %s2219_s28, 4  ;;  %s274_s29 = int_to_ptr.vmem [resolvable:$true] %s2431_s29 }
  0x3c   : > { %s3117_s3 = sld [smem:[#allocation37_spill]]  ;;  %s2440_s13 = scalar_lea.sflag [#allocation10], %s321_s26 }
  0x3d   : > { %p1919_p4 = pneg %p2393_p7 }
  0x3e   : > { %s1504_s20 = sshll.u32 %s333_s2, 10 }
  0x42   : > { %s2436_s8 = scalar_lea.hbm %s3117_s3, %s1504_s20  ;;  %s1922_s14 = scalar_lea.hbm %s3117_s3, 2048 }
  0x43   : > { %s1917_s4 = scalar_lea.hbm %s2436_s8, 1024  ;;  %p1923_p11 = scmp.lt.s32.totalorder %s2436_s8, %s3117_s3 }
  0x44   : > { %p1918_p3 = scmp.ne.s32.totalorder %s2436_s8, %s1917_s4  ;;  %p1924_p12 = scmp.lt.s32.totalorder %s1922_s14, %s1917_s4 }
  0x46   : > { %p1920_p5 = pnand %p1919_p4, %p1918_p3  ;;  %p1925_p10 = por %p1924_p12, %p1923_p11 }
  0x48   : > { %p1921_p8 = pneg %p1920_p5 }
  0x4a   : > { %p1926_p6 = pnand %p1925_p10, %p1921_p8 }
  0x4c   : > { %1929 = shalt.err (!%p1926_p6)
}
  0x4d   : > { %s1930_s26 = scalar_lea.vmem %s2397_s18, 1024  ;;  %s2220_s7 = smov [#allocation9]  }
  0x4e   : > { %p1931_p2 = scmp.ne.s32.totalorder %s2397_s18, %s1930_s26  ;;  %s1935_s6 = sshll.u32 %s2220_s7, 4  ;;  %s1936_s6 = int_to_ptr.vmem [resolvable:$false] %s1935_s6 }
  0x4f   : > { %s1937_s2 = scalar_lea.vmem %s1936_s6, 2048  ;;  %p1938_p5 = scmp.lt.s32.totalorder %s2397_s18, %s1936_s6 }
  0x50   : > { %p1933_p1 = pnand %p1931_p2, %p1919_p4  ;;  %p1939_p9 = scmp.lt.s32.totalorder %s1937_s2, %s1930_s26 }
  0x52   : > { %p1934_p3 = pneg %p1933_p1  ;;  %p1940_p13 = por %p1939_p9, %p1938_p5 }
  0x54   : > { %p1941_p0 = pnand %p1940_p13, %p1934_p3 }
  0x56   : > { %1944 = shalt.err (!%p1941_p0)
}
  0x57   : > { %s3090_s4 = smov 64   ;;  %s3091_s14 = smov 4  }
  0x58   : > { %1716 = dma.hbm_to_vmem [thread:$0]  (!%p2393_p7), %s2436_s8, 1024, %s2397_s18, %s2440_s13, %s3090_s4, %s3090_s4, %s3091_s14  }
  0x59   : > { %p3118_p2 = scmp.eq.s32.totalorder %s2412_s25, 0  ;;  %p3119_p6 = scmp.ne.s32.totalorder %s3116_s19, 0 }
  0x5a   : > { %s1956_s6 = scalar_lea.vmem %s274_s29, 4096  ;;  %p1964_p8 = scmp.lt.s32.totalorder %s274_s29, %s274_s29 }
  0x5b   : > { %p3120_p9 = pneg %p3119_p6  ;;  %p1957_p0 = scmp.ne.s32.totalorder %s274_s29, %s1956_s6 }
  0x5c   : > { %p1965_p11 = scmp.lt.s32.totalorder %s1956_s6, %s1956_s6 }
  0x5d   : > { %p1703_p10 = pnand %p3120_p9, %p3118_p2 }
  0x5e   : > { %p1966_p12 = por %p1965_p11, %p1964_p8 }
  0x5f   : > { %p1947_p13 = pneg %p1703_p10 }
  0x61   : > { %p1959_p1 = pnand %p1957_p0, %p1947_p13 }
  0x63   : > { %p1960_p4 = pneg %p1959_p1 }
  0x65   : > { %p1967_p3 = pnand %p1966_p12, %p1960_p4 }
  0x67   : > { %1970 = shalt.err (!%p1967_p3)
}
  0x68   : > { %s3088_s23 = smov 128   ;;  %s3087_s18 = smov 8  }
  0x69   : > { %s3121_s5 = sld [smem:[#allocation39_spill]]  ;;  %s2478_s10 = ssub.s32 %s2211_s21, %s3187_s24 }
  0x6a   : > { %s71_s20 = ssub.s32 %s2365_s9, %s2378_s27  ;;  %s75_s26 = sadd.s32 1, %s2195_s17 }
  0x6b   : > { %s72_s7 = sor.u32 %s71_s20, %s2478_s10  ;;  %p82_p7 = scmp.ne.s32.totalorder %s2195_s17, %s2191_s16 }
  0x6c   : > { %p73_p5 = scmp.eq.s32.totalorder %s72_s7, 0  ;;  %p88_p2 = scmp.ne.s32.totalorder %s2191_s16, %s2187_s15 }
  0x6d   : > { %p3122_p9 = scmp.eq.s32.totalorder %s2215_s22, 0  ;;  %s290_s2 = sand.u32 1, %s2195_s17  }
  0x6e   : > { %s2492_s6 = scalar_select %p73_p5, %s2195_s17, %s75_s26  }
  0x6f   : > { %1705 = dma.hbm_to_vmem [thread:$0]  (!%p1703_p10), %s3121_s5, 4096, %s274_s29, [#allocation13], %s3088_s23, %s3088_s23, %s3087_s18  }
  0x70   : > { %p84_p13 = por %p3122_p9, %p82_p7  ;;  %p3123_p10 = scmp.eq.s32.totalorder %s2412_s25, 0 }
  0x71   : > { %s1456_s9 = sshll.u32 %s290_s2, 6  ;;  %s1503_s27 = sshll.u32 %s2211_s21, 5 }
  0x72   : > { %p2496_p0 = por %p3123_p10, %p88_p2  ;;  %p3125_p1 = scmp.lt.s32.totalorder %s2215_s22, 4 }
  0x73   : > { %s1686_s8 = scalar_select %p84_p13, [#allocation5], [#allocation17] }
  0x74   : > { %s3124_s29 = scalar_select %p2496_p0, 1, 0 }
  0x75   : > { %p2503_p4 = pnand %p3125_p1, %p84_p13  ;;  %s3193_s30 = smov (!%p84_p13, %s2362_s30), 0 }
  0x76   : > { %p3127_p8 = pmov %p3125_p1  ;;  %p3128_p11 = pmov %p3125_p1 }
  0x77   : > { %s294_s28 = scalar_lea.vmem [#allocation6], %s1456_s9  ;;  %p3093_p3 = scmp.ne.s32.totalorder %s2171_s12, %s2167_s0 }
  0x78   : > { %s3195_s8 = smov (!%p3127_p8, %s1686_s8), [#allocation19]  ;;  %s3197_s30 = smov (!%p3128_p11, %s3193_s30), 0 }
  0x79   : > { %s311_s20 = sshll.u32 %s294_s28, 4  ;;  %s302_s26 = sld [smem:[%s3195_s8 + %s3197_s30]]  ;;  %s2512_s20 = int_to_ptr.vmem [resolvable:$true] %s311_s20 }
  0x7a   : > { %p3092_p7 = scmp.ne.s32.totalorder %s2167_s0, %s2163_s11  ;;  %p3129_p5 = pmov %p3122_p9 }
  0x7b   : > { %s3131_s28 = sld [smem:[#allocation36_spill]]  ;;  %p3132_p9 = pmov %p3123_p10 }
  0x7c   : > { %p2526_p2 = por %p3093_p3, %p3129_p5  ;;  %p1973_p1 = pneg %p2503_p4 }
  0x7d   : > { %p2540_p13 = por %p3092_p7, %p3132_p9 }
  0x7e   : > { %s3130_s14 = scalar_select %p2526_p2, 1, 0 }
  0x7f   : > { %s308_s23 = sadd.s32 %s1503_s27, %s302_s26 }
  0x80   : > { %s1460_s4 = sshll.u32 %s308_s23, 6  ;;  %s2544_s23 = scalar_lea.sflag [#allocation7], %s290_s2 }
  0x81   : > { %s2533_s5 = scalar_lea.hbm %s3131_s28, %s1460_s4  ;;  %s1976_s8 = scalar_lea.hbm %s3131_s28, 4096 }
  0x82   : > { %s3133_s30 = scalar_select %p2540_p13, 1, 0 }
  0x83   : > { %s1971_s27 = scalar_lea.hbm %s2533_s5, 1024  ;;  %p1977_p5 = scmp.lt.s32.totalorder %s2533_s5, %s3131_s28 }
  0x84   : > { %p1972_p10 = scmp.ne.s32.totalorder %s2533_s5, %s1971_s27  ;;  %p1978_p9 = scmp.lt.s32.totalorder %s1976_s8, %s1971_s27 }
  0x86   : > { %p1974_p8 = pnand %p1973_p1, %p1972_p10  ;;  %p1979_p7 = por %p1978_p9, %p1977_p5 }
  0x88   : > { %p1975_p11 = pneg %p1974_p8 }
  0x8a   : > { %p1980_p3 = pnand %p1979_p7, %p1975_p11 }
  0x8c   : > { %1983 = shalt.err (!%p1980_p3)
}
  0x8d   : > { %s1984_s2 = scalar_lea.vmem %s2512_s20, 1024  ;;  %s2225_s7 = smov [#allocation6]  }
  0x8e   : > { %p1985_p12 = scmp.ne.s32.totalorder %s2512_s20, %s1984_s2  ;;  %s1989_s18 = sshll.u32 %s2225_s7, 4  ;;  %s1990_s18 = int_to_ptr.vmem [resolvable:$false] %s1989_s18 }
  0x8f   : > { %s1991_s3 = scalar_lea.vmem %s1990_s18, 2048  ;;  %p1992_p8 = scmp.lt.s32.totalorder %s2512_s20, %s1990_s18 }
  0x90   : > { %p1987_p13 = pnand %p1985_p12, %p1973_p1  ;;  %p1993_p0 = scmp.lt.s32.totalorder %s1991_s3, %s1984_s2 }
  0x92   : > { %p1988_p10 = pneg %p1987_p13  ;;  %p1994_p6 = por %p1993_p0, %p1992_p8 }
  0x94   : > { %p1995_p2 = pnand %p1994_p6, %p1988_p10 }
  0x96   : > { %1998 = shalt.err (!%p1995_p2)
}
  0x97   : > { %s3134_s27 = smov 4   ;;  %s3135_s4 = smov 64  }
  0x98   : > { %s3136_s8 = smov 128   ;;  %s3137_s18 = sadd.s32 1, %s2171_s12 }
  0x99   : > { %1711 = dma.hbm_to_vmem [thread:$0]  (!%p2503_p4), %s2533_s5, 1024, %s2512_s20, %s2544_s23, %s3136_s8, %s3135_s4, %s3134_s27  }
  0x9a   : > { %p3138_p6 = scmp.eq.s32.totalorder %s2478_s10, 0  ;;  %p3139_p0 = scmp.ne.s32.totalorder %s2171_s12, %s2167_s0 }
  0x9b   : > { %p3140_p12 = scmp.eq.s32.totalorder %s2412_s25, 3  ;;  %s3142_s26 = sadd.s32 4294967294, %s2215_s22  }
  0x9c   : > { %s2573_s15 = scalar_select %p3138_p6, %s2171_s12, %s3137_s18  }
  0x9d   : > { %p2580_p3 = por %p3140_p12, %p3139_p0  ;;  %p228_p7 = scmp.eq.s32.totalorder %s3142_s26, 3 }
  0x9e   : > { %s352_s9 = sand.u32 1, %s2171_s12   ;;  %s1505_s2 = sshll.u32 %s2211_s21, 11 }
  0x9f   : > { %p3143_p2 = scmp.ne.s32.totalorder %s2167_s0, %s2163_s11  ;;  %s1465_s5 = sshll.u32 %s352_s9, 7 }
  0xa0   : > { %s3145_s23 = sld [smem:[#allocation38_spill]]  ;;  %s354_s4 = scalar_lea.vmem [#allocation11], %s1465_s5 }
  0xa1   : > { %p2591_p13 = por %p228_p7, %p3143_p2  ;;  %s361_s18 = sshll.u32 %s354_s4, 4  ;;  %s362_s18 = int_to_ptr.vmem [resolvable:$true] %s361_s18 }
  0xa2   : > { %p3146_p4 = scmp.ne.s32.totalorder %s3130_s14, 0  ;;  %p3147_p1 = scmp.lt.s32.totalorder %s2215_s22, 4 }
  0xa3   : > { %s2012_s26 = scalar_lea.vmem %s362_s18, 2048  ;;  %s2226_s9 = smov [#allocation11]  }
  0xa4   : > { %p2602_p11 = pnand %p3147_p1, %p3146_p4  ;;  %p2013_p9 = scmp.ne.s32.totalorder %s362_s18, %s2012_s26 }
  0xa5   : > { %s2017_s24 = sshll.u32 %s2226_s9, 4  ;;  %s2018_s24 = int_to_ptr.vmem [resolvable:$false] %s2017_s24 }
  0xa6   : > { %s360_s27 = scalar_lea.hbm %s3145_s23, %s1505_s2  ;;  %p2001_p5 = pneg %p2602_p11 }
  0xa7   : > { %s2019_s2 = scalar_lea.vmem %s2018_s24, 4096  ;;  %p2020_p6 = scmp.lt.s32.totalorder %s362_s18, %s2018_s24 }
  0xa8   : > { %p2015_p10 = pnand %p2013_p9, %p2001_p5  ;;  %p2021_p0 = scmp.lt.s32.totalorder %s2019_s2, %s2012_s26 }
  0xaa   : > { %p2016_p8 = pneg %p2015_p10  ;;  %p2022_p12 = por %p2021_p0, %p2020_p6 }
  0xac   : > { %p2023_p7 = pnand %p2022_p12, %p2016_p8 }
  0xae   : > { %2026 = shalt.err (!%p2023_p7)
}
  0xaf   : > { %s3149_s14 = smov 8   ;;  %p3150_p2 = scmp.ne.s32.totalorder %s3116_s19, 0 }
  0xb0   : > { %1719 = dma.hbm_to_vmem [thread:$0]  (!%p2602_p11), %s360_s27, 2048, %s362_s18, %s2440_s13, %s3136_s8, %s3136_s8, %s3149_s14  }
  0xb1   : > { %373 = sbr.rel (%p3150_p2) target bundleno = 974 (0x3ce), region = 40  ;;  %s375_s5 = sand.u32 (!%p3150_p2), 1, %s2191_s16  }
  0xb2   : > { %s1469_s20 = sshll.u32 (!%p3150_p2), %s375_s5, 6  ;;  %s376_s10 = scalar_lea.sflag (!%p3150_p2), [#allocation7], %s375_s5 }
  0xb3   : > { %s2617_s24 = scalar_lea.vmem (!%p3150_p2), [#allocation6], %s1469_s20  ;;  %p3151_p4 = scmp.ne.s32.totalorder (!%p3150_p2), %s3124_s29, 0 }
  0xb6   : > { %2138 = dma.done.wait (%p3151_p4), %s376_s10, 1024  }
  0xb7   : > { %2140 = vsyncadd (%p3151_p4), %s376_s10, 4294966272  ;;  %s3152_s28 = sld [smem:[#allocation35_spill]]  ;;  %s384_s23 = sand.u32 1, %s2412_s25  }
  0xb8   : > { %s386_s13 = sand.u32 1, %s2179_s1   ;;  %s385_s19 = scalar_lea.sflag [#allocation10], %s384_s23 }
  0xb9   : > { %s1470_s8 = sshll.u32 %s386_s13, 6 }
  0xba   : > { %s2625_s27 = scalar_lea.vmem [#allocation9], %s1470_s8 }
  0xbd   : > { %p3153_p1 = scmp.ne.s32.totalorder %s3152_s28, 0 }
  0xbf   : > { %2142 = dma.done.wait (%p3153_p1), %s385_s19, 1024  }
  0xc0   : > { %2144 = vsyncadd (%p3153_p1), %s385_s19, 4294966272  ;;  %s2632_s4 = sand.u32 1, %s2167_s0   ;;  %p3154_p11 = scmp.ne.s32.totalorder %s3133_s30, 0 }
  0xc1   : > { %s1471_s29 = sshll.u32 %s2632_s4, 7 }
  0xc2   : > { %s2635_s18 = scalar_lea.vmem [#allocation11], %s1471_s29 }
  0xc3   : > { %2146 = dma.done.wait (%p3154_p11), %s385_s19, 2048  }
  0xc4   : > { %2148 = vsyncadd (%p3154_p11), %s385_s19, 4294965248  ;;  %p3155_p5 = scmp.eq.s32.totalorder %s2412_s25, 0 }
  0xc6   : > { %2150 = dma.done.wait (%p3155_p5), [#allocation13], 4096   ;;  %p3156_p9 = pmov %p3155_p5 }
  0xc7   : > { %s2645_s26 = scalar_lea.vmem [#allocation14], %s1471_s29  ;;  %s2647_s9 = scalar_lea.vmem [#allocation15], %s1471_s29 }
  0xc8   : > { %2152 = vsyncadd (%p3156_p9), [#allocation13], 4294963200  ;;  %s3157_s2 = sld [smem:[#allocation29_spill]] }
  0xce   : > { %p1475_p10 = scmp.ne.s32.totalorder %s3157_s2, 0 }
  0xd0   : > { %470 = sbr.rel (%p1475_p10) target bundleno = 222 (0xde), region = 60 }
  0xd5   : > { %v2227_v0 = vmov 0.0  }
  0xd6   : > { %471 = vst [vmem:[#allocation2 + $0xb0] sm:$0xff] %v2227_v0  ;;  %473 = vst [vmem:[#allocation2 + $0xd8] sm:$0xff] %v2227_v0 }
  0xd7   : > { %475 = vst [vmem:[#allocation2 + $0x50] sm:$0xff] %v2227_v0  ;;  %477 = vst [vmem:[#allocation2 + $0x30] sm:$0xff] %v2227_v0 }
  0xd8   : > { %479 = vst [vmem:[#allocation2 + $0x80] sm:$0xff] %v2227_v0  ;;  %481 = vst [vmem:[#allocation2 + $0xe8] sm:$0xff] %v2227_v0 }
  0xd9   : > { %483 = vst [vmem:[#allocation2 + $0x60] sm:$0xff] %v2227_v0  ;;  %485 = vst [vmem:[#allocation2 + $0x8] sm:$0xff] %v2227_v0 }
  0xda   : > { %487 = vst [vmem:[#allocation2 + $0x38] sm:$0xff] %v2227_v0  ;;  %489 = vst [vmem:[#allocation2 + $0x40] sm:$0xff] %v2227_v0 }
  0xdb   : > { %491 = vst [vmem:[#allocation2 + $0xe0] sm:$0xff] %v2227_v0  ;;  %493 = vst [vmem:[#allocation2 + $0x70] sm:$0xff] %v2227_v0 }
  0xdc   : > { %495 = vst [vmem:[#allocation2 + $0xa8] sm:$0xff] %v2227_v0  ;;  %497 = vst [vmem:[#allocation2 + $0x10] sm:$0xff] %v2227_v0 }
  0xdd   : > { %499 = vst [vmem:[#allocation2 + $0xa0] sm:$0xff] %v2227_v0  ;;  %501 = vst [vmem:[#allocation2 + $0x20] sm:$0xff] %v2227_v0 }
  0xde PF: > { %s3158_s25 = sld [smem:[#allocation30_spill]] }
  0xdf   : > { %s3159_s14 = sld [smem:[#allocation29_spill]] }
  0xe4   : > { %s503_s30 = sld [smem:[#allocation4 + %s3158_s25]] }
  0xea   : > { %p1476_p8 = scmp.ge.s32.totalorder %s3159_s14, %s503_s30 }
  0xec   : > { %507 = sbr.rel (%p1476_p8) target bundleno = 484 (0x1e4), region = 64 }
  0xf1   : > { %v1853_v1 = vld [vmem:[%s2625_s27 + $0x38] sm:$0xff]   ;;  %v1854_v2 = vld [vmem:[%s2625_s27 + $0x30] sm:$0xff]   ;;  %v1855_v3 = vld [vmem:[%s2625_s27 + $0x28] sm:$0xff]  }
  0xf2   : > { %1604 = vmatprep.subr.bf16.mxu0 %v1853_v1  ;;  %1636 = vmatprep.subr.bf16.mxu1 %v1853_v1  ;;  %v1856_v4 = vld [vmem:[%s2625_s27 + $0x20] sm:$0xff]   ;;  %v1857_v7 = vld [vmem:[%s2625_s27 + $0x18] sm:$0xff]   ;;  %v1858_v8 = vld [vmem:[%s2625_s27 + $0x10] sm:$0xff]  }
  0xf3   : > { %1605 = vmatpush3.bf16.msra.mxu0 %v1853_v1  ;;  %1644 = vmatpush3.bf16.msra.mxu1 %v1853_v1  ;;  %v1861_v5 = vld [vmem:[%s2617_s24] sm:$0xff]   ;;  %v1859_v9 = vld [vmem:[%s2625_s27 + $0x8] sm:$0xff]   ;;  %v1865_v13 = vld [vmem:[%s2617_s24 + $0x10] sm:$0xff]  }
  0xf4   : > { %1606 = vmatprep.subr.bf16.mxu0 %v1854_v2  ;;  %1637 = vmatprep.subr.bf16.mxu1 %v1854_v2  ;;  %v1862_v6 = vld [vmem:[%s2617_s24 + $0x20] sm:$0xff]   ;;  %v1863_v11 = vld [vmem:[%s2617_s24 + $0x8] sm:$0xff]   ;;  %v1866_v14 = vld [vmem:[%s2617_s24 + $0x30] sm:$0xff]  }
  0xf5   : > { %1620 = vmatprep.mubr.bf16.mxu0 %v1861_v5  ;;  %1628 = vmatprep.mubr.bf16.mxu1 %v1862_v6  ;;  %v1860_v10 = vld [vmem:[%s2625_s27] sm:$0xff]   ;;  %v1864_v12 = vld [vmem:[%s2617_s24 + $0x28] sm:$0xff]   ;;  %v1867_v15 = vld [vmem:[%s2617_s24 + $0x18] sm:$0xff]  }
  0xf6   : > { %v1868_v16 = vld [vmem:[%s2617_s24 + $0x38] sm:$0xff]   ;;  %v510_v17 = vld [vmem:[#allocation2 + $0x50] sm:$0xff]  ;;  %v518_v18 = vld [vmem:[#allocation2 + $0xe0] sm:$0xff] }
  0xf7   : > { %1607 = vmatpush3.bf16.msra.mxu0 %v1854_v2  ;;  %1645 = vmatpush3.bf16.msra.mxu1 %v1854_v2  ;;  %v508_v21 = vld [vmem:[#allocation2 + $0xb0] sm:$0xff]  ;;  %v516_v22 = vld [vmem:[#allocation2 + $0x38] sm:$0xff]  ;;  %v517_v34 = vld [vmem:[#allocation2 + $0x40] sm:$0xff] }
  0xf8   : > { %1608 = vmatprep.subr.bf16.mxu0 %v1855_v3  ;;  %1638 = vmatprep.subr.bf16.mxu1 %v1855_v3  ;;  %v511_v27 = vld [vmem:[#allocation2 + $0x30] sm:$0xff]  ;;  %v509_v33 = vld [vmem:[#allocation2 + $0xd8] sm:$0xff]  ;;  %v514_v39 = vld [vmem:[#allocation2 + $0x60] sm:$0xff] }
  0xf9   : > { %v519_v28 = vld [vmem:[#allocation2 + $0x70] sm:$0xff]  ;;  %v522_v40 = vld [vmem:[#allocation2 + $0xa0] sm:$0xff]  ;;  %v520_v46 = vld [vmem:[#allocation2 + $0xa8] sm:$0xff] }
  0xfa   : > { %v512_v45 = vld [vmem:[#allocation2 + $0x80] sm:$0xff]  ;;  %v515_v51 = vld [vmem:[#allocation2 + $0x8] sm:$0xff]  ;;  %v521_v58 = vld [vmem:[#allocation2 + $0x10] sm:$0xff] }
  0xfb   : > { %1609 = vmatpush3.bf16.msra.mxu0 %v1855_v3  ;;  %1646 = vmatpush3.bf16.msra.mxu1 %v1855_v3  ;;  %v523_v52 = vld [vmem:[#allocation2 + $0x20] sm:$0xff]  ;;  %v513_v57 = vld [vmem:[#allocation2 + $0xe8] sm:$0xff] }
  0xfc   : > { %1610 = vmatprep.subr.bf16.mxu0 %v1856_v4  ;;  %1639 = vmatprep.subr.bf16.mxu1 %v1856_v4 }
  0xff   : > { %1611 = vmatpush3.bf16.msra.mxu0 %v1856_v4  ;;  %1647 = vmatpush3.bf16.msra.mxu1 %v1856_v4 }
 0x100   : > { %1612 = vmatprep.subr.bf16.mxu0 %v1857_v7  ;;  %1640 = vmatprep.subr.bf16.mxu1 %v1857_v7 }
 0x103   : > { %1613 = vmatpush3.bf16.msra.mxu0 %v1857_v7  ;;  %1648 = vmatpush3.bf16.msra.mxu1 %v1857_v7 }
 0x104   : > { %1614 = vmatprep.subr.bf16.mxu0 %v1858_v8  ;;  %1641 = vmatprep.subr.bf16.mxu1 %v1858_v8 }
 0x107   : > { %1615 = vmatpush3.bf16.msra.mxu0 %v1858_v8  ;;  %1649 = vmatpush3.bf16.msra.mxu1 %v1858_v8 }
 0x108   : > { %1616 = vmatprep.subr.bf16.mxu0 %v1859_v9  ;;  %1642 = vmatprep.subr.bf16.mxu1 %v1859_v9 }
 0x10b   : > { %1617 = vmatpush3.bf16.msra.mxu0 %v1859_v9  ;;  %1650 = vmatpush3.bf16.msra.mxu1 %v1859_v9 }
 0x10c   : > { %1618 = vmatprep.subr.bf16.mxu0 %v1860_v10  ;;  %1643 = vmatprep.subr.bf16.mxu1 %v1860_v10 }
 0x10f   : > { %1619 = vmatpush3.bf16.msra.mxu0 %v1860_v10  ;;  %1651 = vmatpush3.bf16.msra.mxu1 %v1860_v10 }
 0x112   : > { %1621 = vmatmul.mubr.bf16.vlgmr.msra.gmra.mxu0 %v1863_v11  ;;  %1629 = vmatmul.mubr.bf16.vlgmr.msra.gmra.mxu1 %v1864_v12 }
 0x113   : > { %1624 = vmatprep.mubr.bf16.mxu0 %v1865_v13  ;;  %1632 = vmatprep.mubr.bf16.mxu1 %v1866_v14 }
 0x11a   : > { %1625 = vmatmul.mubr.bf16.gmra.mxu0 %v1867_v15  ;;  %1633 = vmatmul.mubr.bf16.gmra.mxu1 %v1868_v16 }
 0x1d2   : > { %v1622_v19 = vpop.f32.mrf.mxu0  ;;  %v1630_v20 = vpop.f32.mrf.mxu1 }
 0x1d3   : > { %v751_v23 = vadd.f32 %v1622_v19, %v510_v17  ;;  %v759_v24 = vadd.f32 %v1630_v20, %v518_v18 }
 0x1d4   : > { %v686_v25 = vpop.f32.mrf.mxu0  ;;  %v718_v26 = vpop.f32.mrf.mxu1 }
 0x1d5   : > { %767 = vst [vmem:[#allocation2 + $0x50] sm:$0xff] %v751_v23  ;;  %775 = vst [vmem:[#allocation2 + $0xe0] sm:$0xff] %v759_v24  ;;  %v749_v29 = vadd.f32 %v686_v25, %v508_v21  ;;  %v757_v30 = vadd.f32 %v718_v26, %v516_v22 }
 0x1d6   : > { %v1623_v31 = vpop.f32.mrf.mxu0  ;;  %v1631_v32 = vpop.f32.mrf.mxu1 }
 0x1d7   : > { %765 = vst [vmem:[#allocation2 + $0xb0] sm:$0xff] %v749_v29  ;;  %773 = vst [vmem:[#allocation2 + $0x38] sm:$0xff] %v757_v30  ;;  %v752_v35 = vadd.f32 %v1623_v31, %v511_v27  ;;  %v760_v36 = vadd.f32 %v1631_v32, %v519_v28 }
 0x1d8   : > { %v689_v37 = vpop.f32.mrf.mxu0  ;;  %v721_v38 = vpop.f32.mrf.mxu1 }
 0x1d9   : > { %768 = vst [vmem:[#allocation2 + $0x30] sm:$0xff] %v752_v35  ;;  %776 = vst [vmem:[#allocation2 + $0x70] sm:$0xff] %v760_v36  ;;  %v750_v41 = vadd.f32 %v689_v37, %v509_v33  ;;  %v758_v42 = vadd.f32 %v721_v38, %v517_v34 }
 0x1da   : > { %v1626_v43 = vpop.f32.mrf.mxu0  ;;  %v1634_v44 = vpop.f32.mrf.mxu1 }
 0x1db   : > { %766 = vst [vmem:[#allocation2 + $0xd8] sm:$0xff] %v750_v41  ;;  %774 = vst [vmem:[#allocation2 + $0x40] sm:$0xff] %v758_v42  ;;  %v755_v47 = vadd.f32 %v1626_v43, %v514_v39  ;;  %v763_v48 = vadd.f32 %v1634_v44, %v522_v40 }
 0x1dc   : > { %v702_v49 = vpop.f32.mrf.mxu0  ;;  %v734_v50 = vpop.f32.mrf.mxu1 }
 0x1dd   : > { %771 = vst [vmem:[#allocation2 + $0x60] sm:$0xff] %v755_v47  ;;  %779 = vst [vmem:[#allocation2 + $0xa0] sm:$0xff] %v763_v48  ;;  %v753_v53 = vadd.f32 %v702_v49, %v512_v45  ;;  %v761_v54 = vadd.f32 %v734_v50, %v520_v46 }
 0x1de   : > { %v1627_v55 = vpop.f32.mrf.mxu0  ;;  %v1635_v56 = vpop.f32.mrf.mxu1 }
 0x1df   : > { %769 = vst [vmem:[#allocation2 + $0x80] sm:$0xff] %v753_v53  ;;  %777 = vst [vmem:[#allocation2 + $0xa8] sm:$0xff] %v761_v54  ;;  %v756_v59 = vadd.f32 %v1627_v55, %v515_v51  ;;  %v764_v60 = vadd.f32 %v1635_v56, %v523_v52 }
 0x1e0   : > { %v705_v61 = vpop.f32.mrf.mxu0  ;;  %v737_v62 = vpop.f32.mrf.mxu1 }
 0x1e1   : > { %772 = vst [vmem:[#allocation2 + $0x8] sm:$0xff] %v756_v59  ;;  %780 = vst [vmem:[#allocation2 + $0x20] sm:$0xff] %v764_v60  ;;  %v754_v63 = vadd.f32 %v705_v61, %v513_v57  ;;  %v762_v0 = vadd.f32 %v737_v62, %v521_v58 }
 0x1e3   : > { %770 = vst [vmem:[#allocation2 + $0xe8] sm:$0xff] %v754_v63  ;;  %778 = vst [vmem:[#allocation2 + $0x10] sm:$0xff] %v762_v0 }
 0x1e4 PF: > { %s3160_s5 = sld [smem:[#allocation29_spill]] }
 0x1ea   : > { %p1493_p6 = scmp.ne.s32.totalorder %s3160_s5, 1 }
 0x1eb   : > { %s3161_s24 = sld [smem:[#allocation40_spill]] (!%p1493_p6) }
 0x1ec   : > { %784 = sbr.rel (%p1493_p6) target bundleno = 926 (0x39e), region = 68 }
 0x1f1   : > { %v912_v1 = vld [vmem:[#allocation12 + $0xf8] sm:$0xff]  ;;  %v911_v3 = vld [vmem:[#allocation12 + $0xf0] sm:$0xff]  ;;  %v910_v5 = vld [vmem:[#allocation12 + $0xe8] sm:$0xff] }
 0x1f2   : > { %v896_v2 = vld [vmem:[#allocation12 + $0x78] sm:$0xff]  ;;  %1524 = vmatprep.subr.mxu0 %v912_v1  ;;  %1652 = vmatprep.subr.mxu1 %v912_v1  ;;  %v895_v4 = vld [vmem:[#allocation12 + $0x70] sm:$0xff]  ;;  %v894_v6 = vld [vmem:[#allocation12 + $0x68] sm:$0xff] }
 0x1f3   : > { %1525 = vmatpush3.msra.mxu0 %v896_v2  ;;  %1668 = vmatpush3.msra.mxu1 %v896_v2  ;;  %v909_v7 = vld [vmem:[#allocation12 + $0xe0] sm:$0xff]  ;;  %v908_v9 = vld [vmem:[#allocation12 + $0xd8] sm:$0xff]  ;;  %v907_v11 = vld [vmem:[#allocation12 + $0xd0] sm:$0xff] }
 0x1f4   : > { %1526 = vmatprep.subr.mxu0 %v911_v3  ;;  %1653 = vmatprep.subr.mxu1 %v911_v3  ;;  %v893_v8 = vld [vmem:[#allocation12 + $0x60] sm:$0xff]  ;;  %v892_v10 = vld [vmem:[#allocation12 + $0x58] sm:$0xff]  ;;  %v891_v12 = vld [vmem:[#allocation12 + $0x50] sm:$0xff] }
 0x1f5   : > { %1527 = vmatpush3.msra.mxu0 %v895_v4  ;;  %1669 = vmatpush3.msra.mxu1 %v895_v4  ;;  %v906_v13 = vld [vmem:[#allocation12 + $0xc8] sm:$0xff]  ;;  %v905_v15 = vld [vmem:[#allocation12 + $0xc0] sm:$0xff]  ;;  %v2669_v16 = vld [vmem:[#allocation2 + $0xb0] sm:$0xff] }
 0x1f6   : > { %1528 = vmatprep.subr.mxu0 %v910_v5  ;;  %1654 = vmatprep.subr.mxu1 %v910_v5  ;;  %v890_v14 = vld [vmem:[#allocation12 + $0x48] sm:$0xff]  ;;  %v889_v17 = vld [vmem:[#allocation12 + $0x40] sm:$0xff]  ;;  %v2672_v19 = vld [vmem:[#allocation2 + $0x38] sm:$0xff] }
 0x1f7   : > { %1529 = vmatpush3.msra.mxu0 %v894_v6  ;;  %1670 = vmatpush3.msra.mxu1 %v894_v6  ;;  %v801_v18 = vld [vmem:[%s2635_s18] sm:$0xff]  ;;  %v904_v21 = vld [vmem:[#allocation12 + $0xb8] sm:$0xff]  ;;  %v802_v25 = vld [vmem:[%s2635_s18 + $0x8] sm:$0xff] }
 0x1f8   : > { %1530 = vmatprep.subr.mxu0 %v909_v7  ;;  %1655 = vmatprep.subr.mxu1 %v909_v7  ;;  %v809_v20 = vld [vmem:[%s2635_s18 + $0x40] sm:$0xff]  ;;  %v2676_v22 = vmul.f32 %v801_v18, %v2669_v16  ;;  %v2681_v24 = vld [vmem:[#allocation2 + $0xd8] sm:$0xff]  ;;  %v810_v29 = vld [vmem:[%s2635_s18 + $0x48] sm:$0xff] }
 0x1f9   : > { %1531 = vmatpush3.msra.mxu0 %v893_v8  ;;  %1671 = vmatpush3.msra.mxu1 %v893_v8  ;;  %v2679_v23 = vmul.f32 %v809_v20, %v2672_v19  ;;  %v2684_v26 = vld [vmem:[#allocation2 + $0x40] sm:$0xff]  ;;  %v888_v27 = vld [vmem:[#allocation12 + $0x38] sm:$0xff]  ;;  %v2687_v28 = vmul.f32 %v802_v25, %v2681_v24  ;;  %v2690_v30 = vld [vmem:[#allocation2 + $0x50] sm:$0xff] }
 0x1fa   : > { %1532 = vmatprep.subr.mxu0 %v908_v9  ;;  %1656 = vmatprep.subr.mxu1 %v908_v9  ;;  %v803_v31 = vld [vmem:[%s2635_s18 + $0x10] sm:$0xff]  ;;  %v2694_v33 = vmul.f32 %v810_v29, %v2684_v26  ;;  %v2699_v35 = vld [vmem:[#allocation2 + $0xe0] sm:$0xff]  ;;  %v804_v40 = vld [vmem:[%s2635_s18 + $0x18] sm:$0xff] }
 0x1fb   : > { %1533 = vmatpush3.msra.mxu0 %v892_v10  ;;  %1672 = vmatpush3.msra.mxu1 %v892_v10  ;;  %v903_v32 = vld [vmem:[#allocation12 + $0xb0] sm:$0xff]  ;;  %v2697_v34 = vmul.f32 %v803_v31, %v2690_v30  ;;  %v812_v42 = vld [vmem:[%s2635_s18 + $0x58] sm:$0xff]  ;;  %v902_v43 = vld [vmem:[#allocation12 + $0xa8] sm:$0xff] }
 0x1fc   : > { %1534 = vmatprep.subr.mxu0 %v907_v11  ;;  %1657 = vmatprep.subr.mxu1 %v907_v11  ;;  %v811_v36 = vld [vmem:[%s2635_s18 + $0x50] sm:$0xff]  ;;  %v2717_v46 = vld [vmem:[#allocation2 + $0x80] sm:$0xff]  ;;  %v2720_v48 = vld [vmem:[#allocation2 + $0xa8] sm:$0xff] }
 0x1fd   : > { %1535 = vmatpush3.msra.mxu0 %v891_v12  ;;  %1673 = vmatpush3.msra.mxu1 %v891_v12  ;;  %v2702_v37 = vld [vmem:[#allocation2 + $0x30] sm:$0xff]  ;;  %v2705_v39 = vmul.f32 %v811_v36, %v2699_v35  ;;  %v805_v47 = vld [vmem:[%s2635_s18 + $0x20] sm:$0xff]  ;;  %v886_v49 = vld [vmem:[#allocation12 + $0x28] sm:$0xff] }
 0x1fe   : > { %1536 = vmatprep.subr.mxu0 %v906_v13  ;;  %1658 = vmatprep.subr.mxu1 %v906_v13  ;;  %v887_v38 = vld [vmem:[#allocation12 + $0x30] sm:$0xff]  ;;  %v2712_v44 = vmul.f32 %v804_v40, %v2702_v37  ;;  %v2723_v50 = vmul.f32 %v805_v47, %v2717_v46  ;;  %v813_v51 = vld [vmem:[%s2635_s18 + $0x60] sm:$0xff]  ;;  %v2726_v52 = vld [vmem:[#allocation2 + $0xe8] sm:$0xff] }
 0x1ff   : > { %1537 = vmatpush3.msra.mxu0 %v890_v14  ;;  %1674 = vmatpush3.msra.mxu1 %v890_v14  ;;  %v2708_v41 = vld [vmem:[#allocation2 + $0x70] sm:$0xff]  ;;  %v806_v53 = vld [vmem:[%s2635_s18 + $0x28] sm:$0xff]  ;;  %v901_v54 = vld [vmem:[#allocation12 + $0xa0] sm:$0xff]  ;;  %v2730_v55 = vmul.f32 %v813_v51, %v2720_v48 }
 0x200   : > { %1538 = vmatprep.subr.mxu0 %v905_v15  ;;  %1659 = vmatprep.subr.mxu1 %v905_v15  ;;  %v2715_v45 = vmul.f32 %v812_v42, %v2708_v41  ;;  %v2733_v56 = vmul.f32 %v806_v53, %v2726_v52  ;;  %v2735_v57 = vld [vmem:[#allocation2 + $0x10] sm:$0xff]  ;;  %v814_v58 = vld [vmem:[%s2635_s18 + $0x68] sm:$0xff]  ;;  %v2738_v59 = vld [vmem:[#allocation2 + $0x60] sm:$0xff] }
 0x201   : > { %1539 = vmatpush3.msra.mxu0 %v889_v17  ;;  %1675 = vmatpush3.msra.mxu1 %v889_v17  ;;  %v2741_v60 = vmul.f32 %v814_v58, %v2735_v57  ;;  %v807_v61 = vld [vmem:[%s2635_s18 + $0x30] sm:$0xff]  ;;  %v2744_v62 = vld [vmem:[#allocation2 + $0xa0] sm:$0xff]  ;;  %v2753_v2 = vld [vmem:[#allocation2 + $0x8] sm:$0xff] }
 0x202   : > { %1540 = vmatprep.subr.mxu0 %v904_v21  ;;  %1660 = vmatprep.subr.mxu1 %v904_v21  ;;  %v815_v63 = vld [vmem:[%s2635_s18 + $0x70] sm:$0xff]  ;;  %v2748_v0 = vmul.f32 %v807_v61, %v2738_v59  ;;  %v808_v3 = vld [vmem:[%s2635_s18 + $0x38] sm:$0xff]  ;;  %v2756_v4 = vld [vmem:[#allocation2 + $0x20] sm:$0xff] }
 0x203   : > { %1541 = vmatpush3.msra.mxu0 %v888_v27  ;;  %1676 = vmatpush3.msra.mxu1 %v888_v27  ;;  %v2751_v1 = vmul.f32 %v815_v63, %v2744_v62  ;;  %v885_v5 = vld [vmem:[#allocation12 + $0x20] sm:$0xff]  ;;  %v824_v6 = vmul.f32 %v808_v3, %v2753_v2  ;;  %v816_v7 = vld [vmem:[%s2635_s18 + $0x78] sm:$0xff]  ;;  %v899_v11 = vld [vmem:[#allocation12 + $0x90] sm:$0xff] }
 0x204   : > { %1542 = vmatprep.subr.mxu0 %v903_v32  ;;  %1661 = vmatprep.subr.mxu1 %v903_v32  ;;  %v900_v8 = vld [vmem:[#allocation12 + $0x98] sm:$0xff]  ;;  %v832_v9 = vmul.f32 %v816_v7, %v2756_v4  ;;  %v883_v12 = vld [vmem:[#allocation12 + $0x10] sm:$0xff]  ;;  %v898_v13 = vld [vmem:[#allocation12 + $0x88] sm:$0xff] }
 0x205   : > { %1543 = vmatpush3.msra.mxu0 %v887_v38  ;;  %1677 = vmatpush3.msra.mxu1 %v887_v38  ;;  %v884_v10 = vld [vmem:[#allocation12 + $0x18] sm:$0xff]  ;;  %v882_v14 = vld [vmem:[#allocation12 + $0x8] sm:$0xff]  ;;  %v897_v15 = vld [vmem:[#allocation12 + $0x80] sm:$0xff] }
 0x206   : > { %1544 = vmatprep.subr.mxu0 %v902_v43  ;;  %1662 = vmatprep.subr.mxu1 %v902_v43  ;;  %v881_v17 = vld [vmem:[#allocation12] sm:$0xff] }
 0x207   : > { %1545 = vmatpush3.msra.mxu0 %v886_v49  ;;  %1678 = vmatpush3.msra.mxu1 %v886_v49 }
 0x208   : > { %1546 = vmatprep.subr.mxu0 %v901_v54  ;;  %1663 = vmatprep.subr.mxu1 %v901_v54 }
 0x209   : > { %1547 = vmatpush3.msra.mxu0 %v885_v5  ;;  %1679 = vmatpush3.msra.mxu1 %v885_v5 }
 0x20a   : > { %1548 = vmatprep.subr.mxu0 %v900_v8  ;;  %1664 = vmatprep.subr.mxu1 %v900_v8 }
 0x20b   : > { %1549 = vmatpush3.msra.mxu0 %v884_v10  ;;  %1680 = vmatpush3.msra.mxu1 %v884_v10 }
 0x20c   : > { %1550 = vmatprep.subr.mxu0 %v899_v11  ;;  %1665 = vmatprep.subr.mxu1 %v899_v11 }
 0x20d   : > { %1551 = vmatpush3.msra.mxu0 %v883_v12  ;;  %1681 = vmatpush3.msra.mxu1 %v883_v12 }
 0x20e   : > { %1552 = vmatprep.subr.mxu0 %v898_v13  ;;  %1666 = vmatprep.subr.mxu1 %v898_v13 }
 0x20f   : > { %1553 = vmatpush3.msra.mxu0 %v882_v14  ;;  %1682 = vmatpush3.msra.mxu1 %v882_v14 }
 0x210   : > { %1554 = vmatprep.subr.mxu0 %v897_v15  ;;  %1667 = vmatprep.subr.mxu1 %v897_v15 }
 0x211   : > { %1555 = vmatpush3.msra.mxu0 %v881_v17  ;;  %1683 = vmatpush3.msra.mxu1 %v881_v17 }
 0x212   : > { %984 = vmatprep.mubr.f32.mxu0 %v2676_v22  ;;  %1024 = vmatprep.mubr.f32.mxu1 %v2679_v23 }
 0x213   : > { %985 = vmatmul.mubr.f32.vlgmr.msra.gmra.mxu0 %v2669_v16  ;;  %1025 = vmatmul.mubr.f32.vlgmr.msra.gmra.mxu1 %v2672_v19  ;;  %v2794_v19 = vld [vmem:[%s3161_s24] ss:$0 sm:$0xff] }
 0x214   : > { %989 = vmatprep.mubr.f32.mxu0 %v2687_v28  ;;  %1029 = vmatprep.mubr.f32.mxu1 %v2694_v33 }
 0x217   : > { %990 = vmatmul.mubr.f32.gmra.mxu0 %v2681_v24  ;;  %1030 = vmatmul.mubr.f32.gmra.mxu1 %v2684_v26 }
 0x218   : > { %994 = vmatprep.mubr.f32.mxu0 %v2697_v34  ;;  %1034 = vmatprep.mubr.f32.mxu1 %v2705_v39 }
 0x21b   : > { %995 = vmatmul.mubr.f32.gmra.mxu0 %v2690_v30  ;;  %1035 = vmatmul.mubr.f32.gmra.mxu1 %v2699_v35 }
 0x21c   : > { %999 = vmatprep.mubr.f32.mxu0 %v2712_v44  ;;  %1039 = vmatprep.mubr.f32.mxu1 %v2715_v45 }
 0x21f   : > { %1000 = vmatmul.mubr.f32.gmra.mxu0 %v2702_v37  ;;  %1040 = vmatmul.mubr.f32.gmra.mxu1 %v2708_v41 }
 0x220   : > { %1004 = vmatprep.mubr.f32.mxu0 %v2723_v50  ;;  %1044 = vmatprep.mubr.f32.mxu1 %v2730_v55 }
 0x223   : > { %1005 = vmatmul.mubr.f32.gmra.mxu0 %v2717_v46  ;;  %1045 = vmatmul.mubr.f32.gmra.mxu1 %v2720_v48 }
 0x224   : > { %1009 = vmatprep.mubr.f32.mxu0 %v2733_v56  ;;  %1049 = vmatprep.mubr.f32.mxu1 %v2741_v60 }
 0x227   : > { %1010 = vmatmul.mubr.f32.gmra.mxu0 %v2726_v52  ;;  %1050 = vmatmul.mubr.f32.gmra.mxu1 %v2735_v57 }
 0x228   : > { %1014 = vmatprep.mubr.f32.mxu0 %v2748_v0  ;;  %1054 = vmatprep.mubr.f32.mxu1 %v2751_v1 }
 0x22b   : > { %1015 = vmatmul.mubr.f32.gmra.mxu0 %v2738_v59  ;;  %1055 = vmatmul.mubr.f32.gmra.mxu1 %v2744_v62 }
 0x22c   : > { %1019 = vmatprep.mubr.f32.mxu0 %v824_v6  ;;  %1059 = vmatprep.mubr.f32.mxu1 %v832_v9 }
 0x22f   : > { %1020 = vmatmul.mubr.f32.gmra.mxu0 %v2753_v2  ;;  %1060 = vmatmul.mubr.f32.gmra.mxu1 %v2756_v4 }
 0x2d3   : > { %v1556_v16 = vpop.f32.mrf.mxu0  ;;  %v1580_v18 = vpop.f32.mrf.mxu1 }
 0x2d5   : > { %v1557_v20 = vpop.f32.mrf.mxu0  ;;  %v1581_v21 = vpop.f32.mrf.mxu1 }
 0x2d6   : > { %v1558_v22 = vadd.f32 %v1557_v20, %v1556_v16  ;;  %v1582_v23 = vadd.f32 %v1581_v21, %v1580_v18 }
 0x2d7   : > { %v1559_v24 = vpop.f32.mrf.mxu0  ;;  %v1583_v25 = vpop.f32.mrf.mxu1 }
 0x2d8   : > { %v987_v26 = vadd.f32 %v1558_v22, %v2794_v19  ;;  %v1027_v27 = vadd.f32 %v1582_v23, %v2794_v19 }
 0x2d9   : > { %v1560_v28 = vpop.f32.mrf.mxu0  ;;  %v1584_v29 = vpop.f32.mrf.mxu1 }
 0x2da   : > { %v1089_v30 = vmul.f32 0.01, %v1027_v27  ;;  %v1561_v31 = vadd.f32 %v1560_v28, %v1559_v24  ;;  %v1585_v32 = vadd.f32 %v1584_v29, %v1583_v25  ;;  %vm1065_vm0 = vcmp.ge.f32.partialorder %v987_v26, 0.0 }
 0x2db   : > { %v1562_v33 = vpop.f32.mrf.mxu0  ;;  %v1586_v34 = vpop.f32.mrf.mxu1  ;;  %v1081_v35 = vmul.f32 0.01, %v987_v26  ;;  %vm1073_vm1 = vcmp.ge.f32.partialorder %v1027_v27, 0.0 }
 0x2dc   : > { %v992_v36 = vadd.f32 %v1561_v31, %v2794_v19  ;;  %v1032_v37 = vadd.f32 %v1585_v32, %v2794_v19  ;;  %v2800_v38 = vsel %vm1073_vm1, %v1027_v27, %v1089_v30 }
 0x2dd   : > { %v1563_v39 = vpop.f32.mrf.mxu0  ;;  %v1587_v40 = vpop.f32.mrf.mxu1  ;;  %v2802_v41 = vsel %vm1065_vm0, %v987_v26, %v1081_v35  ;;  %1121 = vst [vmem:[%s2645_s26 + $0x40] sm:$0xff] %v2800_v38  ;;  %v1137_v55 = vmul.f32 %v2800_v38, %v2800_v38 }
 0x2de   : > { %v1082_v42 = vmul.f32 0.01, %v992_v36  ;;  %v1564_v43 = vadd.f32 %v1563_v39, %v1562_v33  ;;  %v1588_v44 = vadd.f32 %v1587_v40, %v1586_v34  ;;  %v1129_v45 = vmul.f32 %v2802_v41, %v2802_v41  ;;  %1113 = vst [vmem:[%s2645_s26] sm:$0xff] %v2802_v41 }
 0x2df   : > { %v1565_v46 = vpop.f32.mrf.mxu0  ;;  %v1589_v47 = vpop.f32.mrf.mxu1  ;;  %vm1074_vm2 = vcmp.ge.f32.partialorder %v1032_v37, 0.0  ;;  %v1090_v48 = vmul.f32 0.01, %v1032_v37  ;;  %vm1066_vm3 = vcmp.ge.f32.partialorder %v992_v36, 0.0 }
 0x2e0   : > { %v997_v49 = vadd.f32 %v1564_v43, %v2794_v19  ;;  %v1037_v50 = vadd.f32 %v1588_v44, %v2794_v19  ;;  %1145 = vadd.xlane.f32.xlu0 %v1129_v45  ;;  %v2812_v51 = vsel %vm1066_vm3, %v992_v36, %v1082_v42 }
 0x2e1   : > { %v1566_v52 = vpop.f32.mrf.mxu0  ;;  %v1590_v53 = vpop.f32.mrf.mxu1  ;;  %v2814_v54 = vsel %vm1074_vm2, %v1032_v37, %v1090_v48  ;;  %1114 = vst [vmem:[%s2645_s26 + $0x8] sm:$0xff] %v2812_v51  ;;  %v1130_v6 = vmul.f32 %v2812_v51, %v2812_v51 }
 0x2e2   : > { %v1083_v56 = vmul.f32 0.01, %v997_v49  ;;  %v1091_v57 = vmul.f32 0.01, %v1037_v50  ;;  %v1567_v58 = vadd.f32 %v1566_v52, %v1565_v46  ;;  %v1591_v59 = vadd.f32 %v1590_v53, %v1589_v47  ;;  %1122 = vst [vmem:[%s2645_s26 + $0x48] sm:$0xff] %v2814_v54 }
 0x2e3   : > { %v1592_v60 = vpop.f32.mrf.mxu1  ;;  %v1138_v61 = vmul.f32 %v2814_v54, %v2814_v54  ;;  %v1568_v62 = vpop.f32.mrf.mxu0  ;;  %vm1067_vm4 = vcmp.ge.f32.partialorder %v997_v49, 0.0  ;;  %vm1075_vm5 = vcmp.ge.f32.partialorder %v1037_v50, 0.0 }
 0x2e4   : > { %v1002_v63 = vadd.f32 %v1567_v58, %v2794_v19  ;;  %v1042_v0 = vadd.f32 %v1591_v59, %v2794_v19  ;;  %1161 = vadd.xlane.f32.xlu0 %v1137_v55  ;;  %v2826_v1 = vsel %vm1067_vm4, %v997_v49, %v1083_v56  ;;  %v2828_v2 = vsel %vm1075_vm5, %v1037_v50, %v1091_v57 }
 0x2e5   : > { %1163 = vadd.xlane.f32.xlu1 %v1138_v61  ;;  %v1569_v3 = vpop.f32.mrf.mxu0  ;;  %v1593_v4 = vpop.f32.mrf.mxu1  ;;  %v1131_v5 = vmul.f32 %v2826_v1, %v2826_v1  ;;  %1115 = vst [vmem:[%s2645_s26 + $0x10] sm:$0xff] %v2826_v1  ;;  %1123 = vst [vmem:[%s2645_s26 + $0x50] sm:$0xff] %v2828_v2  ;;  %v1139_v21 = vmul.f32 %v2828_v2, %v2828_v2 }
 0x2e6   : > { %v1084_v7 = vmul.f32 0.01, %v1002_v63  ;;  %v1092_v8 = vmul.f32 0.01, %v1042_v0  ;;  %v1570_v9 = vadd.f32 %v1569_v3, %v1568_v62  ;;  %v1594_v10 = vadd.f32 %v1593_v4, %v1592_v60 }
 0x2e7   : > { %v1571_v11 = vpop.f32.mrf.mxu0  ;;  %v1595_v12 = vpop.f32.mrf.mxu1  ;;  %vm1068_vm6 = vcmp.ge.f32.partialorder %v1002_v63, 0.0  ;;  %vm1076_vm7 = vcmp.ge.f32.partialorder %v1042_v0, 0.0 }
 0x2e8   : > { %v1007_v13 = vadd.f32 %v1570_v9, %v2794_v19  ;;  %v1047_v14 = vadd.f32 %v1594_v10, %v2794_v19  ;;  %1147 = vadd.xlane.f32.xlu0 %v1130_v6  ;;  %v2840_v15 = vsel %vm1068_vm6, %v1002_v63, %v1084_v7  ;;  %v2842_v17 = vsel %vm1076_vm7, %v1042_v0, %v1092_v8 }
 0x2e9   : > { %1149 = vadd.xlane.f32.xlu1 %v1131_v5  ;;  %v1572_v16 = vpop.f32.mrf.mxu0  ;;  %v1596_v18 = vpop.f32.mrf.mxu1  ;;  %1116 = vst [vmem:[%s2645_s26 + $0x18] sm:$0xff] %v2840_v15  ;;  %v1132_v20 = vmul.f32 %v2840_v15, %v2840_v15  ;;  %1124 = vst [vmem:[%s2645_s26 + $0x58] sm:$0xff] %v2842_v17  ;;  %v1140_v43 = vmul.f32 %v2842_v17, %v2842_v17 }
 0x2ea   : > { %v1085_v22 = vmul.f32 0.01, %v1007_v13  ;;  %v1093_v23 = vmul.f32 0.01, %v1047_v14  ;;  %v1573_v24 = vadd.f32 %v1572_v16, %v1571_v11  ;;  %v1597_v25 = vadd.f32 %v1596_v18, %v1595_v12 }
 0x2eb   : > { %v1574_v26 = vpop.f32.mrf.mxu0  ;;  %v1598_v27 = vpop.f32.mrf.mxu1  ;;  %vm1069_vm8 = vcmp.ge.f32.partialorder %v1007_v13, 0.0  ;;  %vm1077_vm9 = vcmp.ge.f32.partialorder %v1047_v14, 0.0 }
 0x2ec   : > { %v1012_v28 = vadd.f32 %v1573_v24, %v2794_v19  ;;  %v1052_v29 = vadd.f32 %v1597_v25, %v2794_v19  ;;  %1165 = vadd.xlane.f32.xlu0 %v1139_v21  ;;  %v2854_v30 = vsel %vm1069_vm8, %v1007_v13, %v1085_v22  ;;  %v2856_v31 = vsel %vm1077_vm9, %v1047_v14, %v1093_v23 }
 0x2ed   : > { %1151 = vadd.xlane.f32.xlu1 %v1132_v20  ;;  %v1575_v32 = vpop.f32.mrf.mxu0  ;;  %v1599_v33 = vpop.f32.mrf.mxu1  ;;  %1117 = vst [vmem:[%s2645_s26 + $0x20] sm:$0xff] %v2854_v30  ;;  %v1133_v34 = vmul.f32 %v2854_v30, %v2854_v30  ;;  %1125 = vst [vmem:[%s2645_s26 + $0x60] sm:$0xff] %v2856_v31  ;;  %v1141_v52 = vmul.f32 %v2856_v31, %v2856_v31 }
 0x2ee   : > { %v1086_v35 = vmul.f32 0.01, %v1012_v28  ;;  %v1094_v36 = vmul.f32 0.01, %v1052_v29  ;;  %v1576_v37 = vadd.f32 %v1575_v32, %v1574_v26  ;;  %v1600_v39 = vadd.f32 %v1599_v33, %v1598_v27 }
 0x2ef   : > { %v1577_v40 = vpop.f32.mrf.mxu0  ;;  %v1601_v42 = vpop.f32.mrf.mxu1  ;;  %vm1070_vm10 = vcmp.ge.f32.partialorder %v1012_v28, 0.0  ;;  %vm1078_vm11 = vcmp.ge.f32.partialorder %v1052_v29, 0.0 }
 0x2f0   : > { %v1017_v44 = vadd.f32 %v1576_v37, %v2794_v19  ;;  %v1057_v45 = vadd.f32 %v1600_v39, %v2794_v19  ;;  %1153 = vadd.xlane.f32.xlu0 %v1133_v34  ;;  %v2868_v46 = vsel %vm1070_vm10, %v1012_v28, %v1086_v35  ;;  %v2870_v47 = vsel %vm1078_vm11, %v1052_v29, %v1094_v36 }
 0x2f1   : > { %1167 = vadd.xlane.f32.xlu1 %v1140_v43  ;;  %v1578_v48 = vpop.f32.mrf.mxu0  ;;  %v1602_v49 = vpop.f32.mrf.mxu1  ;;  %1118 = vst [vmem:[%s2645_s26 + $0x28] sm:$0xff] %v2868_v46  ;;  %v1134_v50 = vmul.f32 %v2868_v46, %v2868_v46  ;;  %1126 = vst [vmem:[%s2645_s26 + $0x68] sm:$0xff] %v2870_v47 }
 0x2f2   : > { %v1087_v53 = vmul.f32 0.01, %v1017_v44  ;;  %v1095_v55 = vmul.f32 0.01, %v1057_v45  ;;  %v1579_v56 = vadd.f32 %v1578_v48, %v1577_v40  ;;  %v1603_v57 = vadd.f32 %v1602_v49, %v1601_v42 }
 0x2f3   : > { %vm1071_vm12 = vcmp.ge.f32.partialorder %v1017_v44, 0.0  ;;  %vm1079_vm13 = vcmp.ge.f32.partialorder %v1057_v45, 0.0 }
 0x2f4   : > { %v1022_v58 = vadd.f32 %v1579_v56, %v2794_v19  ;;  %v1062_v59 = vadd.f32 %v1603_v57, %v2794_v19  ;;  %1169 = vadd.xlane.f32.xlu0 %v1141_v52  ;;  %v2882_v60 = vsel %vm1071_vm12, %v1017_v44, %v1087_v53  ;;  %v2884_v61 = vsel %vm1079_vm13, %v1057_v45, %v1095_v55 }
 0x2f5   : > { %1155 = vadd.xlane.f32.xlu1 %v1134_v50  ;;  %1119 = vst [vmem:[%s2645_s26 + $0x30] sm:$0xff] %v2882_v60  ;;  %v1135_v62 = vmul.f32 %v2882_v60, %v2882_v60  ;;  %1127 = vst [vmem:[%s2645_s26 + $0x70] sm:$0xff] %v2884_v61  ;;  %v1142_v19 = vmul.f32 %v2870_v47, %v2870_v47  ;;  %v1143_v6 = vmul.f32 %v2884_v61, %v2884_v61 }
 0x2f6   : > { %v1088_v63 = vmul.f32 0.01, %v1022_v58  ;;  %v1096_v0 = vmul.f32 0.01, %v1062_v59  ;;  %vm1072_vm14 = vcmp.ge.f32.partialorder %v1022_v58, 0.0  ;;  %vm1080_vm15 = vcmp.ge.f32.partialorder %v1062_v59, 0.0 }
 0x2f8   : > { %1157 = vadd.xlane.f32.xlu0 %v1135_v62  ;;  %v2894_v3 = vsel %vm1072_vm14, %v1022_v58, %v1088_v63  ;;  %v2896_v4 = vsel %vm1080_vm15, %v1062_v59, %v1096_v0 }
 0x2f9   : > { %1171 = vadd.xlane.f32.xlu1 %v1142_v19  ;;  %1120 = vst [vmem:[%s2645_s26 + $0x38] sm:$0xff] %v2894_v3  ;;  %v1136_v5 = vmul.f32 %v2894_v3, %v2894_v3  ;;  %1128 = vst [vmem:[%s2645_s26 + $0x78] sm:$0xff] %v2896_v4  ;;  %v1144_v7 = vmul.f32 %v2896_v4, %v2896_v4 }
 0x2fc   : > { %1173 = vadd.xlane.f32.xlu0 %v1143_v6 }
 0x2fd   : > { %1159 = vadd.xlane.f32.xlu1 %v1136_v5 }
 0x301   : > { %1175 = vadd.xlane.f32.xlu1 %v1144_v7 }
 0x369   : > { %v1146_v8 = vpop.xlane.xlu0 %1145 }
 0x36a   : > { %v1177_v9 = vmax.f32 %v1146_v8, 1e-24 }
 0x36c   : > { %1869 = vrsqrt.f32 %v1177_v9 }
 0x36d   : > { %v1162_v10 = vpop.xlane.xlu0 %1161 }
 0x36e   : > { %v1164_v11 = vpop.xlane.xlu1 %1163  ;;  %v1185_v12 = vmax.f32 %v1162_v10, 1e-24 }
 0x36f   : > { %v1186_v13 = vmax.f32 %v1164_v11, 1e-24 }
 0x370   : > { %1871 = vrsqrt.f32 %v1185_v12 }
 0x371   : > { %1873 = vrsqrt.f32 %v1186_v13  ;;  %v1148_v14 = vpop.xlane.xlu0 %1147 }
 0x372   : > { %v1150_v16 = vpop.xlane.xlu1 %1149  ;;  %v1178_v18 = vmax.f32 %v1148_v14, 1e-24 }
 0x373   : > { %v1179_v20 = vmax.f32 %v1150_v16, 1e-24 }
 0x374   : > { %1875 = vrsqrt.f32 %v1178_v18 }
 0x375   : > { %1877 = vrsqrt.f32 %v1179_v20  ;;  %v1166_v21 = vpop.xlane.xlu0 %1165 }
 0x376   : > { %v1152_v22 = vpop.xlane.xlu1 %1151  ;;  %v1187_v23 = vmax.f32 %v1166_v21, 1e-24 }
 0x377   : > { %v1180_v24 = vmax.f32 %v1152_v22, 1e-24 }
 0x378   : > { %1879 = vrsqrt.f32 %v1187_v23 }
 0x379   : > { %v1870_v25 = vpop.eup %1869  ;;  %1881 = vrsqrt.f32 %v1180_v24  ;;  %v1154_v26 = vpop.xlane.xlu0 %1153 }
 0x37a   : > { %v1209_v27 = vmul.f32 %v1870_v25, %v2802_v41  ;;  %v1168_v28 = vpop.xlane.xlu1 %1167  ;;  %v1181_v29 = vmax.f32 %v1154_v26, 1e-24 }
 0x37b   : > { %v1188_v32 = vmax.f32 %v1168_v28, 1e-24 }
 0x37c   : > { %1225 = vst [vmem:[%s2647_s9] sm:$0xff] %v1209_v27  ;;  %1883 = vrsqrt.f32 %v1181_v29 }
 0x37d   : > { %v1872_v33 = vpop.eup %1871  ;;  %1885 = vrsqrt.f32 %v1188_v32  ;;  %v1170_v34 = vpop.xlane.xlu0 %1169 }
 0x37e   : > { %v1874_v35 = vpop.eup %1873  ;;  %v1217_v36 = vmul.f32 %v1872_v33, %v2800_v38  ;;  %v1156_v37 = vpop.xlane.xlu1 %1155  ;;  %v1189_v39 = vmax.f32 %v1170_v34, 1e-24 }
 0x37f   : > { %v1218_v40 = vmul.f32 %v1874_v35, %v2814_v54  ;;  %v1182_v42 = vmax.f32 %v1156_v37, 1e-24 }
 0x380   : > { %1233 = vst [vmem:[%s2647_s9 + $0x40] sm:$0xff] %v1217_v36  ;;  %1887 = vrsqrt.f32 %v1189_v39 }
 0x381   : > { %v1876_v41 = vpop.eup %1875  ;;  %1234 = vst [vmem:[%s2647_s9 + $0x48] sm:$0xff] %v1218_v40  ;;  %1889 = vrsqrt.f32 %v1182_v42  ;;  %v1158_v43 = vpop.xlane.xlu0 %1157 }
 0x382   : > { %v1878_v44 = vpop.eup %1877  ;;  %v1210_v45 = vmul.f32 %v1876_v41, %v2812_v51  ;;  %v1172_v48 = vpop.xlane.xlu1 %1171  ;;  %v1183_v49 = vmax.f32 %v1158_v43, 1e-24 }
 0x383   : > { %v1211_v38 = vmul.f32 %v1878_v44, %v2826_v1  ;;  %v1190_v50 = vmax.f32 %v1172_v48, 1e-24 }
 0x384   : > { %1226 = vst [vmem:[%s2647_s9 + $0x8] sm:$0xff] %v1210_v45  ;;  %1891 = vrsqrt.f32 %v1183_v49 }
 0x385   : > { %v1880_v54 = vpop.eup %1879  ;;  %1227 = vst [vmem:[%s2647_s9 + $0x10] sm:$0xff] %v1211_v38  ;;  %1893 = vrsqrt.f32 %v1190_v50  ;;  %v1174_v52 = vpop.xlane.xlu0 %1173 }
 0x386   : > { %v1882_v53 = vpop.eup %1881  ;;  %v1219_v55 = vmul.f32 %v1880_v54, %v2828_v2  ;;  %v1160_v56 = vpop.xlane.xlu1 %1159  ;;  %v1191_v51 = vmax.f32 %v1174_v52, 1e-24 }
 0x387   : > { %v1212_v57 = vmul.f32 %v1882_v53, %v2840_v15  ;;  %v1184_v58 = vmax.f32 %v1160_v56, 1e-24 }
 0x388   : > { %1235 = vst [vmem:[%s2647_s9 + $0x50] sm:$0xff] %v1219_v55  ;;  %1895 = vrsqrt.f32 %v1191_v51 }
 0x389   : > { %v1884_v1 = vpop.eup %1883  ;;  %1228 = vst [vmem:[%s2647_s9 + $0x18] sm:$0xff] %v1212_v57  ;;  %1897 = vrsqrt.f32 %v1184_v58 }
 0x38a   : > { %v1886_v59 = vpop.eup %1885  ;;  %v1213_v62 = vmul.f32 %v1884_v1, %v2854_v30  ;;  %v1176_v63 = vpop.xlane.xlu1 %1175 }
 0x38b   : > { %v1220_v2 = vmul.f32 %v1886_v59, %v2842_v17  ;;  %v1192_v0 = vmax.f32 %v1176_v63, 1e-24 }
 0x38c   : > { %1229 = vst [vmem:[%s2647_s9 + $0x20] sm:$0xff] %v1213_v62 }
 0x38d   : > { %v1888_v19 = vpop.eup %1887  ;;  %1236 = vst [vmem:[%s2647_s9 + $0x58] sm:$0xff] %v1220_v2  ;;  %1899 = vrsqrt.f32 %v1192_v0 }
 0x38e   : > { %v1890_v15 = vpop.eup %1889  ;;  %v1221_v5 = vmul.f32 %v1888_v19, %v2856_v31 }
 0x38f   : > { %v1214_v6 = vmul.f32 %v1890_v15, %v2868_v46 }
 0x390   : > { %1237 = vst [vmem:[%s2647_s9 + $0x60] sm:$0xff] %v1221_v5 }
 0x391   : > { %v1892_v30 = vpop.eup %1891  ;;  %1230 = vst [vmem:[%s2647_s9 + $0x28] sm:$0xff] %v1214_v6 }
 0x392   : > { %v1894_v7 = vpop.eup %1893  ;;  %v1215_v17 = vmul.f32 %v1892_v30, %v2882_v60 }
 0x393   : > { %v1222_v8 = vmul.f32 %v1894_v7, %v2870_v47 }
 0x394   : > { %1231 = vst [vmem:[%s2647_s9 + $0x30] sm:$0xff] %v1215_v17 }
 0x395   : > { %v1896_v9 = vpop.eup %1895  ;;  %1238 = vst [vmem:[%s2647_s9 + $0x68] sm:$0xff] %v1222_v8 }
 0x396   : > { %v1898_v10 = vpop.eup %1897  ;;  %v1223_v11 = vmul.f32 %v1896_v9, %v2884_v61 }
 0x397   : > { %v1216_v12 = vmul.f32 %v1898_v10, %v2894_v3 }
 0x398   : > { %1239 = vst [vmem:[%s2647_s9 + $0x70] sm:$0xff] %v1223_v11 }
 0x399   : > { %1232 = vst [vmem:[%s2647_s9 + $0x38] sm:$0xff] %v1216_v12 }
 0x39a   : > { %v1900_v31 = vpop.eup %1899 }
 0x39b   : > { %v1224_v46 = vmul.f32 %v1900_v31, %v2896_v4 }
 0x39d   : > { %1240 = vst [vmem:[%s2647_s9 + $0x78] sm:$0xff] %v1224_v46 }
 0x39e PF: > { %s3162_s28 = sld [smem:[#allocation30_spill]]  ;;  %s1260_s18 = sshll.u32 %s2645_s26, 4  ;;  %s2949_s18 = int_to_ptr.vmem [resolvable:$true] %s1260_s18 }
 0x39f   : > { %s3163_s19 = sld [smem:[#allocation41_spill]]  ;;  %s1242_s2 = scalar_lea.sflag [#allocation8], %s2632_s4 }
 0x3a0   : > { %s2027_s25 = scalar_lea.vmem %s2949_s18, 2048  ;;  %s2228_s30 = smov [#allocation14]  }
 0x3a1   : > { %p2028_p0 = scmp.ne.s32.totalorder %s2949_s18, %s2027_s25  ;;  %s2031_s14 = sshll.u32 %s2228_s30, 4  ;;  %s2032_s14 = int_to_ptr.vmem [resolvable:$false] %s2031_s14 }
 0x3a2   : > { %s2033_s5 = scalar_lea.vmem %s2032_s14, 4096  ;;  %p2034_p2 = scmp.lt.s32.totalorder %s2949_s18, %s2032_s14 }
 0x3a3   : > { %p2029_p12 = pnand %p2028_p0, %p2580_p3  ;;  %p2035_p4 = scmp.lt.s32.totalorder %s2033_s5, %s2027_s25 }
 0x3a4   : > { %s1506_s23 = sshll.u32 %s3162_s28, 11 }
 0x3a5   : > { %s3164_s27 = smov %s3163_s19  ;;  %s2946_s29 = scalar_lea.hbm %s3163_s19, %s1506_s23 }
 0x3a6   : > { %p2030_p7 = pneg %p2029_p12  ;;  %p2036_p1 = por %p2035_p4, %p2034_p2 }
 0x3a8   : > { %p2037_p11 = pnand %p2036_p1, %p2030_p7 }
 0x3aa   : > { %2040 = shalt.err (!%p2037_p11)
}
 0x3ab   : > { %s2041_s26 = scalar_lea.hbm %s2946_s29, 2048  ;;  %s2045_s24 = scalar_lea.hbm %s3164_s27, 4096 }
 0x3ac   : > { %p2042_p5 = scmp.ne.s32.totalorder %s2946_s29, %s2041_s26  ;;  %p2046_p8 = scmp.lt.s32.totalorder %s2946_s29, %s3164_s27 }
 0x3ad   : > { %p2047_p6 = scmp.lt.s32.totalorder %s2045_s24, %s2041_s26 }
 0x3ae   : > { %p2043_p9 = pnand %p2042_p5, %p2580_p3 }
 0x3af   : > { %p2048_p0 = por %p2047_p6, %p2046_p8 }
 0x3b0   : > { %p2044_p10 = pneg %p2043_p9 }
 0x3b2   : > { %p2049_p12 = pnand %p2048_p0, %p2044_p10 }
 0x3b4   : > { %2052 = shalt.err (!%p2049_p12)
}
 0x3b5   : > { %s2229_s19 = smov 128   ;;  %s2230_s25 = smov 8  }
 0x3b6   : > { %1698 = dma.vmem_to_hbm [thread:$0]  (%p2580_p3), %s2949_s18, 2048, %s2946_s29, %s1242_s2, %s2229_s19, %s2229_s19, %s2230_s25  }
 0x3b7   : > { %s3165_s5 = sld [smem:[#allocation42_spill]]  ;;  %s1276_s20 = sshll.u32 %s2647_s9, 4  ;;  %s2985_s20 = int_to_ptr.vmem [resolvable:$true] %s1276_s20 }
 0x3b8   : > { %s1247_s10 = scalar_lea.sflag [#allocation16], %s2632_s4  ;;  %s2053_s24 = scalar_lea.vmem %s2985_s20, 2048 }
 0x3b9   : > { %p2054_p7 = scmp.ne.s32.totalorder %s2985_s20, %s2053_s24  ;;  %s2231_s13 = smov [#allocation15]  }
 0x3ba   : > { %s2057_s29 = sshll.u32 %s2231_s13, 4  ;;  %s2058_s29 = int_to_ptr.vmem [resolvable:$false] %s2057_s29 }
 0x3bb   : > { %p2055_p2 = pnand %p2054_p7, %p2580_p3  ;;  %s2059_s28 = scalar_lea.vmem %s2058_s29, 4096 }
 0x3bc   : > { %p2060_p1 = scmp.lt.s32.totalorder %s2985_s20, %s2058_s29  ;;  %p2061_p11 = scmp.lt.s32.totalorder %s2059_s28, %s2053_s24 }
 0x3bd   : > { %s2982_s26 = scalar_lea.hbm %s3165_s5, %s1506_s23  ;;  %p2056_p4 = pneg %p2055_p2 }
 0x3be   : > { %p2062_p5 = por %p2061_p11, %p2060_p1 }
 0x3c0   : > { %p2063_p9 = pnand %p2062_p5, %p2056_p4 }
 0x3c2   : > { %2066 = shalt.err (!%p2063_p9)
}
 0x3c3   : > { %s2067_s9 = scalar_lea.hbm %s2982_s26, 2048  ;;  %s2071_s18 = scalar_lea.hbm %s3165_s5, 4096 }
 0x3c4   : > { %p2068_p10 = scmp.ne.s32.totalorder %s2982_s26, %s2067_s9  ;;  %p2072_p0 = scmp.lt.s32.totalorder %s2982_s26, %s3165_s5 }
 0x3c5   : > { %p2073_p12 = scmp.lt.s32.totalorder %s2071_s18, %s2067_s9 }
 0x3c6   : > { %p2069_p8 = pnand %p2068_p10, %p2580_p3 }
 0x3c7   : > { %p2074_p7 = por %p2073_p12, %p2072_p0 }
 0x3c8   : > { %p2070_p6 = pneg %p2069_p8 }
 0x3ca   : > { %p2075_p2 = pnand %p2074_p7, %p2070_p6 }
 0x3cc   : > { %2078 = shalt.err (!%p2075_p2)
}
 0x3cd   : > { %1699 = dma.vmem_to_hbm [thread:$0]  (%p2580_p3), %s2985_s20, 2048, %s2982_s26, %s1247_s10, %s2229_s19, %s2229_s19, %s2230_s25  }
 0x3ce PF: > { %p1730_p4 = scmp.ge.s32.totalorder %s2215_s22, 2  ;;  %s1291_s30 = sand.u32 1, %s2163_s11  }
 0x3cf   : > { %s1292_s14 = scalar_lea.sflag [#allocation8], %s1291_s30 }
 0x3d0   : > { %p1721_p1 = pnand %p1730_p4, %p2591_p13 }
 0x3d2   : > { %p1722_p11 = pneg %p1721_p1 }
 0x3d4   : > { %2154 = dma.done.wait (%p1722_p11), %s1292_s14, 2048  }
 0x3d5   : > { %2156 = vsyncadd (%p1722_p11), %s1292_s14, 4294965248  ;;  %s1301_s24 = scalar_lea.sflag [#allocation16], %s1291_s30 }
 0x3d6   : > { %2158 = dma.done.wait (%p1722_p11), %s1301_s24, 2048  }
 0x3d7   : > { %2160 = vsyncadd (%p1722_p11), %s1301_s24, 4294965248  ;;  %s38_s22 = sadd.s32 1, %s2215_s22   ;;  %s3167_s19 = sld [smem:[#allocation28_spill]] }
 0x3d8   : > { %p3016_p5 = scmp.ge.s32.totalorder %s38_s22, 6   ;;  %s3168_s14 = sld [smem:[#allocation34_spill]] }
 0x3d9   : > { %s3169_s18 = sld [smem:[#allocation31_spill]]  ;;  %s3172_s11 = smov %s2167_s0 }
 0x3da   : > { %s3170_s20 = sld [smem:[#allocation32_spill]]  ;;  %s3173_s0 = smov %s2171_s12 }
 0x3db   : > { %s3171_s3 = sld [smem:[#allocation33_spill]]  ;;  %s3174_s12 = smov %s2573_s15 }
 0x3dc   : > { %s3175_s13 = smov %s2179_s1  ;;  %s3177_s15 = smov %s2191_s16 }
 0x3dd   : > { %s3176_s1 = smov %s3167_s19  ;;  %s3178_s16 = smov %s2195_s17 }
 0x3de   : > { %s3179_s17 = smov %s2492_s6  ;;  %s3180_s19 = smov %s2211_s21 }
 0x3df   :  { %37 = sbr.rel (!%p3016_p5) target bundleno = 28 (0x1c), region = 142 }
 0x3e1   : > { %s3181_s21 = smov %s3171_s3 }
 0x3e4   :  { %1306 = vsyncpa [#allocation7], 1 }
 0x3e5   :  { %1308 = vsyncpa [#allocation7 + $0x1], 1 }
 0x3e6   :  { %1309 = vsyncpa [#allocation10], 1 }
 0x3e7   :  { %1311 = vsyncpa [#allocation10 + $0x1], 1 }
 0x3e8   :  { %1312 = vsyncpa [#allocation13], 1 }
 0x3e9   :  { %1313 = vsyncpa [#allocation8], 1 }
 0x3ea   :  { %1315 = vsyncpa [#allocation8 + $0x1], 1 }
 0x3eb   :  { %1316 = vsyncpa [#allocation16], 1 }
 0x3ec   :  { %1318 = vsyncpa [#allocation16 + $0x1], 1 }

</bundles_post_ra>
